<compile_context>
chip_gen: v7x
topology: tpu7x:2x2x1
jax: 0.10.0
libtpu: 0.0.40
codegen_flags: <defaults>
</compile_context>

<pallas_src>
import jax
import jax.numpy as jnp
from jax.experimental import pallas as pl
from jax.experimental.pallas import tpu as pltpu

# ----- small synthetic sizes consistent with the module -----
IMG_C, IMG_H, IMG_W = 3, 64, 32          # input image, CHW
PATCH = 4
FH, FW = IMG_H // PATCH, IMG_W // PATCH  # 16 x 8 backbone feature map == kernal_size=(16, 8)
FEATSIZE = 32                            # cfg.MODEL.FEATSIZE
S = FH * FW                              # 128 flattened spatial positions
PDIM = IMG_C * PATCH * PATCH             # 48 patch feature dim
NPIX = IMG_C * IMG_H * IMG_W             # 6144 pixels (multiple of 128 -> lane dense)
BN_EPS = 1e-5                            # nn.BatchNorm2d default
TB = 8                                   # batch tile (rows per grid step); sublane-aligned


# ---------------- fused kernel ----------------

def _fused_kernel(x_ref, a_ref, d_ref, o_ref):
    # x_ref : (TB, NPIX) f32 image rows (lane-dense, NPIX % 128 == 0)
    # a_ref : (NPIX, FEATSIZE) bf16 folded linear map -- VMEM-resident across grid steps
    # d_ref : (1, FEATSIZE) f32 folded bias
    x_bf = x_ref[...].astype(jnp.bfloat16)
    o_ref[...] = (
        jnp.dot(x_bf, a_ref[...], preferred_element_type=jnp.float32) + d_ref[...]
    )


# ---------------- trace-time constant folding (params only, done once) ----------------

def fold_params(params):
    """Fold preprocess + linear backbone stand-in + gap conv + eval-mode BN into (A, d)."""
    mean = params["mean"].astype(jnp.float32)                       # (3,)
    inv_std = 1.0 / params["std"].astype(jnp.float32)               # (3,)
    bb_w = params["bb_w"].astype(jnp.float32)                       # (48, 32)
    bb_b = params["bb_b"].astype(jnp.float32).reshape(FEATSIZE)     # (32,)
    gap_w = params["gap_w"].astype(jnp.float32)                     # (32, 128)  (C, 16*8)
    gap_b = params["gap_b"].astype(jnp.float32).reshape(FEATSIZE)   # (32,)
    gamma = params["bn_gamma"].reshape(FEATSIZE)
    beta = params["bn_beta"].reshape(FEATSIZE)
    mu = params["bn_mean"].reshape(FEATSIZE)
    var = params["bn_var"].reshape(FEATSIZE)

    # backbone weight broadcast to per-pixel: bb_w[(c,ph,pw), co] -> (c, h, w, co)
    bb_w4 = bb_w.reshape(IMG_C, PATCH, PATCH, FEATSIZE)                         # [c, ph, pw, co]
    bb_full = jnp.broadcast_to(
        bb_w4[:, None, :, None, :, :], (IMG_C, FH, PATCH, FW, PATCH, FEATSIZE)
    ).reshape(IMG_C, IMG_H, IMG_W, FEATSIZE)                                    # [c, h, w, co]

    # depthwise gap weight broadcast to per-pixel: gap_w[co, (fh,fw)] -> (h, w, co)
    gap3 = gap_w.reshape(FEATSIZE, FH, FW)                                      # [co, fh, fw]
    gap_full = jnp.broadcast_to(
        gap3[:, :, None, :, None], (FEATSIZE, FH, PATCH, FW, PATCH)
    ).reshape(FEATSIZE, IMG_H, IMG_W)
    gap_full = jnp.transpose(gap_full, (1, 2, 0))                               # [h, w, co]

    # B[c,h,w,co] = inv_std[c] * bb_w[d(c,h,w), co] * gap_w[co, s(h,w)]
    B = inv_std[:, None, None, None] * bb_full * gap_full[None, :, :, :]        # (3,64,32,32)

    bn_scale = gamma * jax.lax.rsqrt(var + BN_EPS)                              # (32,)
    bn_shift = beta - mu * bn_scale                                             # (32,)

    sg = gap_w.sum(axis=1)                                                      # (32,)
    c0 = -jnp.einsum("chwo,c->o", B, mean) + bb_b * sg + gap_b                  # (32,)

    A_f32 = (bn_scale[None, None, None, :] * B).reshape(NPIX, FEATSIZE)         # (6144, 32)
    d = (bn_scale * c0 + bn_shift).reshape(1, FEATSIZE)                         # (1, 32)
    return {
        "A_f32": A_f32,                       # kept only for tight fold validation
        "A": A_f32.astype(jnp.bfloat16),      # kernel weight: halves the dominant DMA
        "d": d,
    }


# ---------------- forward ----------------

@jax.jit
def torch_script_model1(x_batch, A, d):
    """x_batch: (B, C, H, W) raw images -> (B, FEATSIZE). Each row == one module forward."""
    B = x_batch.shape[0]
    x_flat = x_batch.astype(jnp.float32).reshape(B, NPIX)   # contiguous (free) reshape
    Bp = ((B + TB - 1) // TB) * TB
    if Bp != B:                                              # static pad to a TB multiple
        x_flat = jnp.pad(x_flat, ((0, Bp - B), (0, 0)))
    grid = (Bp // TB,)

    cost = pl.CostEstimate(
        flops=2 * Bp * NPIX * FEATSIZE,
        transcendentals=0,
        bytes_accessed=(NPIX * FEATSIZE * 2          # A (bf16)
                        + Bp * NPIX * 4              # x
                        + Bp * FEATSIZE * 4          # y
                        + FEATSIZE * 4),             # d
    )

    y = pl.pallas_call(
        _fused_kernel,
        out_shape=jax.ShapeDtypeStruct((Bp, FEATSIZE), jnp.float32),
        grid=grid,
        in_specs=[
            pl.BlockSpec((TB, NPIX), lambda i: (i, 0)),            # batch-tiled, pipelined
            pl.BlockSpec((NPIX, FEATSIZE), lambda i: (0, 0)),      # weight: VMEM-resident
            pl.BlockSpec((1, FEATSIZE), lambda i: (0, 0)),         # bias:   VMEM-resident
        ],
        out_specs=pl.BlockSpec((TB, FEATSIZE), lambda i: (i, 0)),
        compiler_params=pltpu.CompilerParams(dimension_semantics=("parallel",)),
        cost_estimate=cost,
    )(x_flat, A, d)
    return y[:B]  # (B, FEATSIZE) == view(-1, C) per image


# ---------------- pure-JAX reference of the original staged pipeline ----------------

def reference_forward(x, params):
    mean = params["mean"].reshape(IMG_C, 1, 1)
    std = params["std"].reshape(IMG_C, 1, 1)
    xn = (x.astype(jnp.float32) - mean) / std                       # preprocess
    xn = xn[None]                                                   # unsqueeze(0)
    # backbone stand-in: non-overlapping 4x4 patch embed
    p = xn.reshape(1, IMG_C, FH, PATCH, FW, PATCH)
    p = jnp.transpose(p, (0, 2, 4, 1, 3, 5)).reshape(S, PDIM)
    z = p @ params["bb_w"] + params["bb_b"]                         # (128, 32)
    feat = jnp.transpose(z, (1, 0))                                 # (C, 16*8)
    # head: depthwise (16,8) conv (groups=C) + bias, then eval-mode BN
    conv = jnp.sum(feat * params["gap_w"], axis=-1) + params["gap_b"].reshape(-1)
    scale = params["bn_gamma"].reshape(-1) * jax.lax.rsqrt(params["bn_var"].reshape(-1) + BN_EPS)
    y = (conv - params["bn_mean"].reshape(-1)) * scale + params["bn_beta"].reshape(-1)
    return y.reshape(1, FEATSIZE)


# ---------------- deterministic param init ----------------

def make_params():
    keys = jax.random.split(jax.random.PRNGKey(42), 6)
    params = {
        "mean": jnp.array([0.485, 0.456, 0.406], jnp.float32),
        "std": jnp.array([0.229, 0.224, 0.225], jnp.float32),
        # backbone stand-in (patch embed)
        "bb_w": 0.05 * jax.random.normal(keys[0], (PDIM, FEATSIZE), jnp.float32),
        "bb_b": 0.01 * jax.random.normal(keys[1], (1, FEATSIZE), jnp.float32),
        # StaticReIDTrickHead.gap : depthwise conv (C, 1, 16, 8) flattened to (C, 128) + bias
        "gap_w": (1.0 / S)
        + 0.01 * jax.random.normal(keys[2], (FEATSIZE, S), jnp.float32),
        "gap_b": 0.01 * jax.random.normal(keys[3], (1, FEATSIZE), jnp.float32),
        # StaticReIDTrickHead.BNNeck : BatchNorm2d(C), eval-mode running stats
        "bn_gamma": jnp.ones((1, FEATSIZE), jnp.float32),
        "bn_beta": jnp.zeros((1, FEATSIZE), jnp.float32),
        "bn_mean": 0.01 * jax.random.normal(keys[4], (1, FEATSIZE), jnp.float32),
        "bn_var": jnp.ones((1, FEATSIZE), jnp.float32)
        + 0.01 * jnp.abs(jax.random.normal(keys[5], (1, FEATSIZE), jnp.float32)),
    }
    return params


if __name__ == "__main__":
    params = make_params()
    folded = fold_params(params)          # one-time constant fold of all affine stages

    BATCH = 16
    x = jax.random.uniform(
        jax.random.PRNGKey(0), (BATCH, IMG_C, IMG_H, IMG_W), jnp.float32
    )

    # staged reference, per image
    y_ref = jnp.concatenate([reference_forward(x[b], params) for b in range(BATCH)], axis=0)

    # 1) tight f32 validation of the constant fold itself (catches folding bugs)
    y_fold_f32 = x.reshape(BATCH, NPIX) @ folded["A_f32"] + folded["d"]
    assert jnp.allclose(y_fold_f32, y_ref, rtol=5e-4, atol=5e-5), "f32 fold mismatch"

    # 2) Pallas kernel (bf16 weight, f32 accumulation)
    y = torch_script_model1(x, folded["A"], folded["d"])
    y = jax.block_until_ready(y)
    assert y.shape == (BATCH, FEATSIZE) and y.dtype == jnp.float32
    assert jnp.allclose(y, y_ref, rtol=3e-2, atol=3e-2), "bf16 kernel mismatch"

    # single-image path (original module semantics: one CHW image -> (1, C))
    y1 = torch_script_model1(x[:1], folded["A"], folded["d"])
    y1 = jax.block_until_ready(y1)
    assert y1.shape == (1, FEATSIZE)
    assert jnp.allclose(y1, y_ref[:1], rtol=3e-2, atol=3e-2)

    print("KERNEL_OK")
</pallas_src>

<mosaic_0001>
module attributes {stable_mosaic.version = 11 : i64} {
  func.func @_fused_kernel(%arg0: i32, %arg1: memref<8x6144xf32, #tpu.memory_space<vmem>>, %arg2: memref<6144x32xbf16, #tpu.memory_space<vmem>>, %arg3: memref<1x32xf32, #tpu.memory_space<vmem>>, %arg4: memref<8x32xf32, #tpu.memory_space<vmem>>) attributes {dimension_semantics = [#tpu.dimension_semantics<parallel>], iteration_bounds = array<i64: 2>, scalar_prefetch = 0 : i64, scratch_operands = 0 : i64, tpu.core_type = #tpu.core_type<tc>, window_params = [{transform_indices = @transform_0, window_bounds = array<i64: 8, 6144>}, {pipeline_mode = #tpu.pipeline_mode<synchronous>, transform_indices = @transform_1, window_bounds = array<i64: 6144, 32>}, {pipeline_mode = #tpu.pipeline_mode<synchronous>, transform_indices = @transform_2, window_bounds = array<i64: 1, 32>}, {transform_indices = @transform_3, window_bounds = array<i64: 8, 32>}]} {
    %c0 = arith.constant 0 : index
    %c0_0 = arith.constant 0 : index
    %0 = vector.load %arg1[%c0, %c0_0] : memref<8x6144xf32, #tpu.memory_space<vmem>>, vector<8x6144xf32>
    %1 = arith.truncf %0 : vector<8x6144xf32> to vector<8x6144xbf16>
    %c0_1 = arith.constant 0 : index
    %c0_2 = arith.constant 0 : index
    %2 = vector.load %arg2[%c0_1, %c0_2] : memref<6144x32xbf16, #tpu.memory_space<vmem>>, vector<6144x32xbf16>
    %cst = arith.constant dense<0.000000e+00> : vector<8x32xf32>
    %3 = tpu.matmul %1, %2, %cst {dimension_numbers = #tpu.dot_dimension_numbers<[1], [0], [0], [1], [0, 0, 1, 1], [], []>} : vector<8x6144xbf16>, vector<6144x32xbf16>, vector<8x32xf32> -> vector<8x32xf32>
    %c0_3 = arith.constant 0 : index
    %c0_4 = arith.constant 0 : index
    %4 = vector.load %arg3[%c0_3, %c0_4] : memref<1x32xf32, #tpu.memory_space<vmem>>, vector<1x32xf32>
    %5 = vector.broadcast %4 : vector<1x32xf32> to vector<8x32xf32>
    %6 = arith.addf %3, %5 : vector<8x32xf32>
    %c0_5 = arith.constant 0 : index
    %c0_6 = arith.constant 0 : index
    %7 = vector.load %arg4[%c0_5, %c0_6] : memref<8x32xf32, #tpu.memory_space<vmem>>, vector<8x32xf32>
    tpu.vector_store %arg4[%c0_5, %c0_6], %6 {strides = array<i32>} : memref<8x32xf32, #tpu.memory_space<vmem>>, vector<8x32xf32>,
    return
  }
  func.func @transform_0(%arg0: i32) -> (i32, i32) {
    %c0_i32 = arith.constant 0 : i32
    %c0_i32_0 = arith.constant 0 : i32
    return %arg0, %c0_i32 : i32, i32
  }
  func.func @transform_1(%arg0: i32) -> (i32, i32) {
    %c0_i32 = arith.constant 0 : i32
    %c0_i32_0 = arith.constant 0 : i32
    %c0_i32_1 = arith.constant 0 : i32
    return %c0_i32, %c0_i32_0 : i32, i32
  }
  func.func @transform_2(%arg0: i32) -> (i32, i32) {
    %c0_i32 = arith.constant 0 : i32
    %c0_i32_0 = arith.constant 0 : i32
    %c0_i32_1 = arith.constant 0 : i32
    return %c0_i32, %c0_i32_0 : i32, i32
  }
  func.func @transform_3(%arg0: i32) -> (i32, i32) {
    %c0_i32 = arith.constant 0 : i32
    %c0_i32_0 = arith.constant 0 : i32
    return %arg0, %c0_i32 : i32, i32
  }
}

</mosaic_0001>

<bundles_post_ra>
// kernel: torch_script_model1.1
= control target key start
LH: loop header
LB: loop body
LE: loop exit
PB: predicated region body
PF: predicated region fallthrough
CT: control target
= control target key end

     0   :  { %8 = vsyncpa [#allocation3], 0  ;;  %s7129_s0 = inlined_call_operand.vmem [shape: f32[16,6144], index: 0, kind: input, shape index: {}]   ;;  %s7130_s1 = inlined_call_operand.vmem [shape: bf16[6144,32], index: 1, kind: input, shape index: {}]   ;;  %s7131_s2 = inlined_call_operand.vmem [shape: f32[1,32], index: 2, kind: input, shape index: {}]   ;;  %s7132_s3 = inlined_call_operand.hbm [shape: f32[16,32], index: 3, kind: output, shape index: {}]  }
   0x1   :  { %10 = vsyncpa [#allocation3 + $0x1], 0  ;;  %s5812_s12 = smov 0   ;;  %s5814_s13 = smov 0  }
   0x2   :  { %s5816_s14 = smov 0   ;;  %s5818_s15 = smov 0  }
   0x3 LB: > { %s5833_s16 = sadd.s32 4294967295, %s5789_s15   ;;  %s4380_s17 = sadd.s32 4294967294, %s5789_s15   ;;  %s5789_s15 = sphi %s5818_s15, %s7138_s15   ;;  %s5785_s14 = sphi %s5816_s14, %s7137_s14   ;;  %s5781_s13 = sphi %s5814_s13, %s7136_s13   ;;  %s5777_s12 = sphi %s5812_s12, %s7135_s12  }
   0x4   : > { %s5837_s18 = sadd.s32 1, %s5789_s15   ;;  %s91_s19 = sadd.s32 1, %s5785_s14 }
   0x5   : > { %s88_s20 = ssub.s32 %s5789_s15, %s5837_s18  ;;  %p101_p0 = scmp.ne.s32.totalorder %s5785_s14, %s5781_s13 }
   0x6   : > { %p89_p1 = scmp.eq.s32.totalorder %s88_s20, 0  ;;  %p102_p2 = scmp.eq.s32.totalorder %s5833_s16, 1 }
   0x7   : > { %p107_p3 = scmp.ne.s32.totalorder %s5781_s13, %s5777_s12  ;;  %p108_p4 = scmp.eq.s32.totalorder %s4380_s17, 1 }
   0x8   : > { %s5848_s21 = scalar_select %p89_p1, %s5785_s14, %s91_s19  }
   0x9   : > { %p5850_p5 = por %p102_p2, %p101_p0  ;;  %p5854_p6 = por %p108_p4, %p107_p3 }
   0xa   : > { %p4383_p7 = scmp.ge.s32.totalorder %s5789_s15, 1  ;;  %p140_p8 = scmp.lt.s32.totalorder %s5789_s15, 3 }
   0xc   : > { %p141_p9 = pnand %p4383_p7, %p140_p8 }
   0xd   : > { %v5343_v0 = vld [vmem:[%s7130_s1 + $0x40] sm:$0xff] (!%p141_p9)   ;;  %v5347_v4 = vld [vmem:[%s7130_s1 + $0x48] sm:$0xff] (!%p141_p9)   ;;  %v5351_v8 = vld [vmem:[%s7130_s1 + $0x50] sm:$0xff] (!%p141_p9)   ;;  %p164_p10 = scmp.lt.s32.totalorder (!%p141_p9), %s5833_s16, 1  ;;  %s4772_s4 = sshll.u32 (!%p141_p9), %s5833_s16, 7  ;;  %vm4305_vm0 = vcmask (!%p141_p9), 261120  }
   0xe   : > { %144 = sbr.rel (%p141_p9) target bundleno = 632 (0x278), region = 32  ;;  %v5344_v1 = vld [vmem:[%s7130_s1 + $0xc0] sm:$0xff] (!%p141_p9)   ;;  %4775 = vmatprep.subr.bf16.mxu0 (!%p141_p9), %v5343_v0  ;;  %v5348_v5 = vld [vmem:[%s7130_s1 + $0xc8] sm:$0xff] (!%p141_p9)   ;;  %v5352_v9 = vld [vmem:[%s7130_s1 + $0xd0] sm:$0xff] (!%p141_p9)   ;;  %s7087_s10 = scalar_lea.hbm (!%p141_p9), %s7132_s3, %s4772_s4 }
   0xf   : > { %v5345_v2 = vld [vmem:[%s7130_s1] sm:$0xff] (!%p141_p9)   ;;  %4797 = vmatprep.subr.bf16.mxu1 (!%p141_p9), %v5344_v1  ;;  %v5349_v6 = vld [vmem:[%s7130_s1 + $0x8] sm:$0xff] (!%p141_p9)   ;;  %v5353_v10 = vld [vmem:[%s7130_s1 + $0x10] sm:$0xff] (!%p141_p9)  }
  0x10   : > { %v5346_v3 = vld [vmem:[%s7130_s1 + $0x80] sm:$0xff] (!%p141_p9)   ;;  %4776 = vmatpush3.bf16.msra.mxu0 (!%p141_p9), %v5345_v2  ;;  %v5350_v7 = vld [vmem:[%s7130_s1 + $0x88] sm:$0xff] (!%p141_p9)   ;;  %v5354_v11 = vld [vmem:[%s7130_s1 + $0x90] sm:$0xff] (!%p141_p9)  }
  0x11   : > { %4798 = vmatpush3.bf16.msra.mxu1 (!%p141_p9), %v5346_v3  ;;  %4777 = vmatprep.subr.bf16.mxu0 (!%p141_p9), %v5347_v4  ;;  %v5355_v12 = vld [vmem:[%s7130_s1 + $0x58] sm:$0xff] (!%p141_p9)   ;;  %v5359_v16 = vld [vmem:[%s7130_s1 + $0x60] sm:$0xff] (!%p141_p9)   ;;  %v5363_v20 = vld [vmem:[%s7130_s1 + $0x68] sm:$0xff] (!%p141_p9)  }
  0x12   : > { %4799 = vmatprep.subr.bf16.mxu1 (!%p141_p9), %v5348_v5  ;;  %v5356_v13 = vld [vmem:[%s7130_s1 + $0xd8] sm:$0xff] (!%p141_p9)   ;;  %v5360_v17 = vld [vmem:[%s7130_s1 + $0xe0] sm:$0xff] (!%p141_p9)   ;;  %v5364_v21 = vld [vmem:[%s7130_s1 + $0xe8] sm:$0xff] (!%p141_p9)  }
  0x13   : > { %v5357_v14 = vld [vmem:[%s7130_s1 + $0x18] sm:$0xff] (!%p141_p9)   ;;  %v5361_v18 = vld [vmem:[%s7130_s1 + $0x20] sm:$0xff] (!%p141_p9)   ;;  %v5365_v22 = vld [vmem:[%s7130_s1 + $0x28] sm:$0xff] (!%p141_p9)  }
  0x14   : > { %4778 = vmatpush3.bf16.msra.mxu0 (!%p141_p9), %v5349_v6  ;;  %v5358_v15 = vld [vmem:[%s7130_s1 + $0x98] sm:$0xff] (!%p141_p9)   ;;  %v5362_v19 = vld [vmem:[%s7130_s1 + $0xa0] sm:$0xff] (!%p141_p9)   ;;  %v5366_v23 = vld [vmem:[%s7130_s1 + $0xa8] sm:$0xff] (!%p141_p9)  }
  0x15   : > { %4800 = vmatpush3.bf16.msra.mxu1 %v5350_v7  ;;  %4779 = vmatprep.subr.bf16.mxu0 %v5351_v8  ;;  %s165_s5 = scalar_select %p164_p10, %s5833_s16, 1  ;;  %v5367_v24 = vld [vmem:[%s7130_s1 + $0x70] sm:$0xff]   ;;  %v5371_v28 = vld [vmem:[%s7130_s1 + $0x78] sm:$0xff]   ;;  %v5375_v40 = vld [vmem:[%s7130_s1 + $0x140] sm:$0xff]  }
  0x16   : > { %4801 = vmatprep.subr.bf16.mxu1 %v5352_v9  ;;  %v5368_v25 = vld [vmem:[%s7130_s1 + $0xf0] sm:$0xff]   ;;  %v5372_v29 = vld [vmem:[%s7130_s1 + $0xf8] sm:$0xff]   ;;  %v5376_v41 = vld [vmem:[%s7130_s1 + $0x1c0] sm:$0xff]   ;;  %s5791_s16 = smov [#allocation2]  }
  0x17   : > { %s5303_s20 = smul.u32 384, %s165_s5  ;;  %v5369_v26 = vld [vmem:[%s7130_s1 + $0x30] sm:$0xff]   ;;  %v5373_v30 = vld [vmem:[%s7130_s1 + $0x38] sm:$0xff]   ;;  %v5377_v42 = vld [vmem:[%s7130_s1 + $0x100] sm:$0xff]   ;;  %s5731_s19 = sshll.u32 %s5791_s16, 4  ;;  %s5732_s19 = int_to_ptr.vmem [resolvable:$false] %s5731_s19 }
  0x18   : > { %4780 = vmatpush3.bf16.msra.mxu0 %v5353_v10  ;;  %v5370_v27 = vld [vmem:[%s7130_s1 + $0xb0] sm:$0xff]   ;;  %v5374_v31 = vld [vmem:[%s7130_s1 + $0xb8] sm:$0xff]   ;;  %v5378_v43 = vld [vmem:[%s7130_s1 + $0x180] sm:$0xff]  }
  0x19   : > { %4802 = vmatpush3.bf16.msra.mxu1 %v5354_v11  ;;  %4781 = vmatprep.subr.bf16.mxu0 %v5355_v12  ;;  %s5955_s7 = scalar_lea.vmem %s7129_s0, %s5303_s20  ;;  %v5379_v44 = vld [vmem:[%s7130_s1 + $0x148] sm:$0xff]   ;;  %v5383_v48 = vld [vmem:[%s7130_s1 + $0x150] sm:$0xff]   ;;  %v5387_v52 = vld [vmem:[%s7130_s1 + $0x158] sm:$0xff]   ;;  %s5733_s20 = scalar_lea.vmem %s5732_s19, 256 }
  0x1a   : > { %4803 = vmatprep.subr.bf16.mxu1 %v5356_v13  ;;  %v171_v32 = vld [vmem:[%s5955_s7 + $0x8] sm:$0xff]  ;;  %v173_v33 = vld [vmem:[%s5955_s7 + $0x18] sm:$0xff]  ;;  %v170_v34 = vld [vmem:[%s5955_s7] sm:$0xff] }
  0x1b   : > { %v219_v35 = vpack.c.bf16 %v171_v32, %v171_v32  ;;  %v221_v36 = vpack.c.bf16 %v173_v33, %v173_v33  ;;  %v218_v37 = vpack.c.bf16 %v170_v34, %v170_v34  ;;  %v172_v38 = vld [vmem:[%s5955_s7 + $0x10] sm:$0xff]  ;;  %v5380_v45 = vld [vmem:[%s7130_s1 + $0x1c8] sm:$0xff]   ;;  %v5388_v53 = vld [vmem:[%s7130_s1 + $0x1d8] sm:$0xff]  }
  0x1c   : > { %4782 = vmatpush3.bf16.msra.mxu0 %v5357_v14  ;;  %v220_v39 = vpack.c.bf16 %v172_v38, %v172_v38  ;;  %v5381_v46 = vld [vmem:[%s7130_s1 + $0x108] sm:$0xff]   ;;  %v5384_v49 = vld [vmem:[%s7130_s1 + $0x1d0] sm:$0xff]   ;;  %v5389_v54 = vld [vmem:[%s7130_s1 + $0x118] sm:$0xff]  }
  0x1d   : > { %4804 = vmatpush3.bf16.msra.mxu1 %v5358_v15  ;;  %4783 = vmatprep.subr.bf16.mxu0 %v5359_v16  ;;  %v5382_v47 = vld [vmem:[%s7130_s1 + $0x188] sm:$0xff]   ;;  %v5385_v50 = vld [vmem:[%s7130_s1 + $0x110] sm:$0xff]   ;;  %v5390_v55 = vld [vmem:[%s7130_s1 + $0x198] sm:$0xff]  }
  0x1e   : > { %4805 = vmatprep.subr.bf16.mxu1 %v5360_v17  ;;  %3377 = vmatprep.mubr.bf16.mxu0 %v219_v35  ;;  %v5386_v51 = vld [vmem:[%s7130_s1 + $0x190] sm:$0xff]   ;;  %v5391_v56 = vld [vmem:[%s7130_s1 + $0x160] sm:$0xff]   ;;  %v5395_v60 = vld [vmem:[%s7130_s1 + $0x168] sm:$0xff]  }
  0x1f   : > { %3417 = vmatprep.mubr.bf16.mxu1 %v221_v36  ;;  %v5392_v57 = vld [vmem:[%s7130_s1 + $0x1e0] sm:$0xff]   ;;  %v5396_v61 = vld [vmem:[%s7130_s1 + $0x1e8] sm:$0xff]   ;;  %v5399_v0 = vld [vmem:[%s7130_s1 + $0x170] sm:$0xff]  }
  0x20   : > { %4784 = vmatpush3.bf16.msra.mxu0 %v5361_v18  ;;  %v5393_v58 = vld [vmem:[%s7130_s1 + $0x120] sm:$0xff]   ;;  %v5397_v62 = vld [vmem:[%s7130_s1 + $0x128] sm:$0xff]   ;;  %v5400_v1 = vld [vmem:[%s7130_s1 + $0x1f0] sm:$0xff]  }
  0x21   : > { %4806 = vmatpush3.bf16.msra.mxu1 %v5362_v19  ;;  %4785 = vmatprep.subr.bf16.mxu0 %v5363_v20  ;;  %v5394_v59 = vld [vmem:[%s7130_s1 + $0x1a0] sm:$0xff]   ;;  %v5398_v63 = vld [vmem:[%s7130_s1 + $0x1a8] sm:$0xff]   ;;  %v5401_v2 = vld [vmem:[%s7130_s1 + $0x130] sm:$0xff]  }
  0x22   : > { %4807 = vmatprep.subr.bf16.mxu1 %v5364_v21  ;;  %v5402_v3 = vld [vmem:[%s7130_s1 + $0x1b0] sm:$0xff]   ;;  %v5403_v4 = vld [vmem:[%s7130_s1 + $0x178] sm:$0xff]   ;;  %v175_v8 = vld [vmem:[%s5955_s7 + $0x28] sm:$0xff] }
  0x23   : > { %v5404_v5 = vld [vmem:[%s7130_s1 + $0x1f8] sm:$0xff]   ;;  %v223_v10 = vpack.c.bf16 %v175_v8, %v175_v8  ;;  %v174_v12 = vld [vmem:[%s5955_s7 + $0x20] sm:$0xff]  ;;  %v176_v13 = vld [vmem:[%s5955_s7 + $0x30] sm:$0xff] }
  0x24   : > { %4786 = vmatpush3.bf16.msra.mxu0 %v5365_v22  ;;  %v5405_v6 = vld [vmem:[%s7130_s1 + $0x138] sm:$0xff]   ;;  %v222_v14 = vpack.c.bf16 %v174_v12, %v174_v12  ;;  %v224_v15 = vpack.c.bf16 %v176_v13, %v176_v13  ;;  %v5407_v16 = vld [vmem:[%s7130_s1 + $0x240] sm:$0xff]   ;;  %v5411_v20 = vld [vmem:[%s7130_s1 + $0x248] sm:$0xff]  }
  0x25   : > { %4808 = vmatpush3.bf16.msra.mxu1 %v5366_v23  ;;  %4787 = vmatprep.subr.bf16.mxu0 %v5367_v24  ;;  %v5406_v7 = vld [vmem:[%s7130_s1 + $0x1b8] sm:$0xff]   ;;  %v5408_v17 = vld [vmem:[%s7130_s1 + $0x2c0] sm:$0xff]   ;;  %v5412_v21 = vld [vmem:[%s7130_s1 + $0x2c8] sm:$0xff]  }
  0x26   : > { %4809 = vmatprep.subr.bf16.mxu1 %v5368_v25  ;;  %v177_v9 = vld [vmem:[%s5955_s7 + $0x38] sm:$0xff]  ;;  %v5409_v18 = vld [vmem:[%s7130_s1 + $0x200] sm:$0xff]   ;;  %v5413_v22 = vld [vmem:[%s7130_s1 + $0x208] sm:$0xff]  }
  0x27   : > { %v225_v11 = vpack.c.bf16 %v177_v9, %v177_v9  ;;  %v5410_v19 = vld [vmem:[%s7130_s1 + $0x280] sm:$0xff]   ;;  %v5414_v23 = vld [vmem:[%s7130_s1 + $0x288] sm:$0xff]   ;;  %v5415_v24 = vld [vmem:[%s7130_s1 + $0x250] sm:$0xff]  }
  0x28   : > { %4788 = vmatpush3.bf16.msra.mxu0 %v5369_v26  ;;  %v5416_v25 = vld [vmem:[%s7130_s1 + $0x2d0] sm:$0xff]   ;;  %v5423_v32 = vld [vmem:[%s7130_s1 + $0x260] sm:$0xff]   ;;  %v5427_v36 = vld [vmem:[%s7130_s1 + $0x268] sm:$0xff]  }
  0x29   : > { %4810 = vmatpush3.bf16.msra.mxu1 %v5370_v27  ;;  %4789 = vmatprep.subr.bf16.mxu0 %v5371_v28  ;;  %v5417_v26 = vld [vmem:[%s7130_s1 + $0x210] sm:$0xff]   ;;  %v5419_v28 = vld [vmem:[%s7130_s1 + $0x258] sm:$0xff]   ;;  %v5424_v33 = vld [vmem:[%s7130_s1 + $0x2e0] sm:$0xff]  }
  0x2a   : > { %4811 = vmatprep.subr.bf16.mxu1 %v5372_v29  ;;  %v5418_v27 = vld [vmem:[%s7130_s1 + $0x290] sm:$0xff]   ;;  %v5420_v29 = vld [vmem:[%s7130_s1 + $0x2d8] sm:$0xff]   ;;  %v5425_v34 = vld [vmem:[%s7130_s1 + $0x220] sm:$0xff]  }
  0x2b   : > { %v5426_v35 = vld [vmem:[%s7130_s1 + $0x2a0] sm:$0xff]   ;;  %v5429_v38 = vld [vmem:[%s7130_s1 + $0x228] sm:$0xff]  }
  0x2c   : > { %4790 = vmatpush3.bf16.msra.mxu0 %v5373_v30  ;;  %v5421_v30 = vld [vmem:[%s7130_s1 + $0x218] sm:$0xff]   ;;  %v5455_v8 = vld [vmem:[%s7130_s1 + $0x360] sm:$0xff]   ;;  %v5459_v12 = vld [vmem:[%s7130_s1 + $0x368] sm:$0xff]  }
  0x2d   : > { %4812 = vmatpush3.bf16.msra.mxu1 %v5374_v31  ;;  %4819 = vmatprep.subr.bf16.mxu0 %v5375_v40  ;;  %v5422_v31 = vld [vmem:[%s7130_s1 + $0x298] sm:$0xff]   ;;  %v5431_v40 = vld [vmem:[%s7130_s1 + $0x270] sm:$0xff]   ;;  %v5456_v9 = vld [vmem:[%s7130_s1 + $0x3e0] sm:$0xff]  }
  0x2e   : > { %4841 = vmatprep.subr.bf16.mxu1 %v5376_v41  ;;  %v5432_v41 = vld [vmem:[%s7130_s1 + $0x2f0] sm:$0xff]   ;;  %v5460_v13 = vld [vmem:[%s7130_s1 + $0x3e8] sm:$0xff]  }
  0x2f   : > { %3378 = vmatmul.mubr.bf16.vlgmr.msra.gmra.mrb[0].mxu0 %v218_v37  ;;  %v5428_v37 = vld [vmem:[%s7130_s1 + $0x2e8] sm:$0xff]  }
  0x30   : > { %3418 = vmatmul.mubr.bf16.vlgmr.msra.gmra.mrb[0].mxu1 %v220_v39  ;;  %4820 = vmatpush3.bf16.msra.mxu0 %v5377_v42  ;;  %v5430_v39 = vld [vmem:[%s7130_s1 + $0x2a8] sm:$0xff]   ;;  %v5433_v42 = vld [vmem:[%s7130_s1 + $0x230] sm:$0xff]  }
  0x31   : > { %4842 = vmatpush3.bf16.msra.mxu1 %v5378_v43  ;;  %4821 = vmatprep.subr.bf16.mxu0 %v5379_v44  ;;  %v5434_v43 = vld [vmem:[%s7130_s1 + $0x2b0] sm:$0xff]   ;;  %v5435_v44 = vld [vmem:[%s7130_s1 + $0x278] sm:$0xff]  }
  0x32   : > { %4843 = vmatprep.subr.bf16.mxu1 %v5380_v45  ;;  %3457 = vmatprep.mubr.bf16.mxu0 %v223_v10  ;;  %v5436_v45 = vld [vmem:[%s7130_s1 + $0x2f8] sm:$0xff]   ;;  %v5457_v10 = vld [vmem:[%s7130_s1 + $0x320] sm:$0xff]  }
  0x33   : > { %3497 = vmatprep.mubr.bf16.mxu1 %v225_v11  ;;  %v5458_v11 = vld [vmem:[%s7130_s1 + $0x3a0] sm:$0xff]  }
  0x34   : > { %4822 = vmatpush3.bf16.msra.mxu0 %v5381_v46  ;;  %v5437_v46 = vld [vmem:[%s7130_s1 + $0x238] sm:$0xff]  }
  0x35   : > { %4844 = vmatpush3.bf16.msra.mxu1 %v5382_v47  ;;  %4823 = vmatprep.subr.bf16.mxu0 %v5383_v48  ;;  %v5438_v47 = vld [vmem:[%s7130_s1 + $0x2b8] sm:$0xff]   ;;  %v179_v48 = vld [vmem:[%s5955_s7 + $0x48] sm:$0xff] }
  0x36   : > { %4845 = vmatprep.subr.bf16.mxu1 %v5384_v49  ;;  %v227_v49 = vpack.c.bf16 %v179_v48, %v179_v48  ;;  %v5487_v48 = vld [vmem:[%s7130_s1 + $0x460] sm:$0xff]  }
  0x38   : > { %4824 = vmatpush3.bf16.msra.mxu0 %v5385_v50  ;;  %v181_v50 = vld [vmem:[%s5955_s7 + $0x58] sm:$0xff] }
  0x39   : > { %4846 = vmatpush3.bf16.msra.mxu1 %v5386_v51  ;;  %4825 = vmatprep.subr.bf16.mxu0 %v5387_v52  ;;  %v178_v51 = vld [vmem:[%s5955_s7 + $0x40] sm:$0xff]  ;;  %v180_v52 = vld [vmem:[%s5955_s7 + $0x50] sm:$0xff] }
  0x3a   : > { %4847 = vmatprep.subr.bf16.mxu1 %v5388_v53  ;;  %v229_v53 = vpack.c.bf16 %v181_v50, %v181_v50  ;;  %v5489_v50 = vld [vmem:[%s7130_s1 + $0x420] sm:$0xff]  }
  0x3c   : > { %4826 = vmatpush3.bf16.msra.mxu0 %v5389_v54  ;;  %v226_v54 = vpack.c.bf16 %v178_v51, %v178_v51  ;;  %v5490_v51 = vld [vmem:[%s7130_s1 + $0x4a0] sm:$0xff]  }
  0x3d   : > { %4848 = vmatpush3.bf16.msra.mxu1 %v5390_v55  ;;  %4827 = vmatprep.subr.bf16.mxu0 %v5391_v56  ;;  %v228_v55 = vpack.c.bf16 %v180_v52, %v180_v52  ;;  %v5439_v56 = vld [vmem:[%s7130_s1 + $0x340] sm:$0xff]   ;;  %v5491_v52 = vld [vmem:[%s7130_s1 + $0x468] sm:$0xff]  }
  0x3e   : > { %4849 = vmatprep.subr.bf16.mxu1 %v5392_v57  ;;  %v5440_v57 = vld [vmem:[%s7130_s1 + $0x3c0] sm:$0xff]  }
  0x40   : > { %4828 = vmatpush3.bf16.msra.mxu0 %v5393_v58  ;;  %v5441_v58 = vld [vmem:[%s7130_s1 + $0x300] sm:$0xff]  }
  0x41   : > { %4850 = vmatpush3.bf16.msra.mxu1 %v5394_v59  ;;  %4829 = vmatprep.subr.bf16.mxu0 %v5395_v60  ;;  %v5442_v59 = vld [vmem:[%s7130_s1 + $0x380] sm:$0xff]   ;;  %v5443_v60 = vld [vmem:[%s7130_s1 + $0x348] sm:$0xff]  }
  0x42   : > { %4851 = vmatprep.subr.bf16.mxu1 %v5396_v61  ;;  %v5444_v61 = vld [vmem:[%s7130_s1 + $0x3c8] sm:$0xff]  }
  0x44   : > { %4830 = vmatpush3.bf16.msra.mxu0 %v5397_v62  ;;  %v5445_v62 = vld [vmem:[%s7130_s1 + $0x308] sm:$0xff]  }
  0x45   : > { %4852 = vmatpush3.bf16.msra.mxu1 %v5398_v63  ;;  %4831 = vmatprep.subr.bf16.mxu0 %v5399_v0  ;;  %v5446_v63 = vld [vmem:[%s7130_s1 + $0x388] sm:$0xff]   ;;  %v5447_v0 = vld [vmem:[%s7130_s1 + $0x350] sm:$0xff]  }
  0x46   : > { %4853 = vmatprep.subr.bf16.mxu1 %v5400_v1  ;;  %v5448_v1 = vld [vmem:[%s7130_s1 + $0x3d0] sm:$0xff]  }
  0x48   : > { %4832 = vmatpush3.bf16.msra.mxu0 %v5401_v2  ;;  %v5449_v2 = vld [vmem:[%s7130_s1 + $0x310] sm:$0xff]  }
  0x49   : > { %4854 = vmatpush3.bf16.msra.mxu1 %v5402_v3  ;;  %4833 = vmatprep.subr.bf16.mxu0 %v5403_v4  ;;  %v5450_v3 = vld [vmem:[%s7130_s1 + $0x390] sm:$0xff]   ;;  %v5451_v4 = vld [vmem:[%s7130_s1 + $0x358] sm:$0xff]  }
  0x4a   : > { %4855 = vmatprep.subr.bf16.mxu1 %v5404_v5  ;;  %v5452_v5 = vld [vmem:[%s7130_s1 + $0x3d8] sm:$0xff]  }
  0x4c   : > { %4834 = vmatpush3.bf16.msra.mxu0 %v5405_v6  ;;  %v5453_v6 = vld [vmem:[%s7130_s1 + $0x318] sm:$0xff]  }
  0x4d   : > { %4856 = vmatpush3.bf16.msra.mxu1 %v5406_v7  ;;  %4863 = vmatprep.subr.bf16.mxu0 %v5407_v16  ;;  %v5454_v7 = vld [vmem:[%s7130_s1 + $0x398] sm:$0xff]   ;;  %v5463_v16 = vld [vmem:[%s7130_s1 + $0x370] sm:$0xff]  }
  0x4e   : > { %4885 = vmatprep.subr.bf16.mxu1 %v5408_v17  ;;  %v5464_v17 = vld [vmem:[%s7130_s1 + $0x3f0] sm:$0xff]  }
  0x4f   : > { %3458 = vmatmul.mubr.bf16.vlgmr.msra.gmra.mrb[4].mxu0 %v222_v14  ;;  %v5461_v14 = vld [vmem:[%s7130_s1 + $0x328] sm:$0xff]  }
  0x50   : > { %3498 = vmatmul.mubr.bf16.vlgmr.msra.gmra.mrb[4].mxu1 %v224_v15  ;;  %4864 = vmatpush3.bf16.msra.mxu0 %v5409_v18  ;;  %v5462_v15 = vld [vmem:[%s7130_s1 + $0x3a8] sm:$0xff]   ;;  %v5465_v18 = vld [vmem:[%s7130_s1 + $0x330] sm:$0xff]  }
  0x51   : > { %4886 = vmatpush3.bf16.msra.mxu1 %v5410_v19  ;;  %4865 = vmatprep.subr.bf16.mxu0 %v5411_v20  ;;  %v5466_v19 = vld [vmem:[%s7130_s1 + $0x3b0] sm:$0xff]   ;;  %v5467_v20 = vld [vmem:[%s7130_s1 + $0x378] sm:$0xff]  }
  0x52   : > { %4887 = vmatprep.subr.bf16.mxu1 %v5412_v21  ;;  %3537 = vmatprep.mubr.bf16.mxu0 %v227_v49  ;;  %v5468_v21 = vld [vmem:[%s7130_s1 + $0x3f8] sm:$0xff]   ;;  %v5488_v49 = vld [vmem:[%s7130_s1 + $0x4e0] sm:$0xff]  }
  0x53   : > { %3577 = vmatprep.mubr.bf16.mxu1 %v229_v53  ;;  %v5492_v53 = vld [vmem:[%s7130_s1 + $0x4e8] sm:$0xff]  }
  0x54   : > { %4866 = vmatpush3.bf16.msra.mxu0 %v5413_v22  ;;  %v5469_v22 = vld [vmem:[%s7130_s1 + $0x338] sm:$0xff]  }
  0x55   : > { %4888 = vmatpush3.bf16.msra.mxu1 %v5414_v23  ;;  %4867 = vmatprep.subr.bf16.mxu0 %v5415_v24  ;;  %v5470_v23 = vld [vmem:[%s7130_s1 + $0x3b8] sm:$0xff]   ;;  %v183_v24 = vld [vmem:[%s5955_s7 + $0x68] sm:$0xff] }
  0x56   : > { %4889 = vmatprep.subr.bf16.mxu1 %v5416_v25  ;;  %v185_v25 = vld [vmem:[%s5955_s7 + $0x78] sm:$0xff] }
  0x58   : > { %4868 = vmatpush3.bf16.msra.mxu0 %v5417_v26  ;;  %v182_v26 = vld [vmem:[%s5955_s7 + $0x60] sm:$0xff] }
  0x59   : > { %4890 = vmatpush3.bf16.msra.mxu1 %v5418_v27  ;;  %4869 = vmatprep.subr.bf16.mxu0 %v5419_v28  ;;  %v231_v27 = vpack.c.bf16 %v183_v24, %v183_v24  ;;  %v233_v28 = vpack.c.bf16 %v185_v25, %v185_v25  ;;  %v5519_v24 = vld [vmem:[%s7130_s1 + $0x560] sm:$0xff]  }
  0x5a   : > { %4891 = vmatprep.subr.bf16.mxu1 %v5420_v29  ;;  %v230_v29 = vpack.c.bf16 %v182_v26, %v182_v26  ;;  %v5520_v25 = vld [vmem:[%s7130_s1 + $0x5e0] sm:$0xff]  }
  0x5b   : > { %v5521_v26 = vld [vmem:[%s7130_s1 + $0x520] sm:$0xff]  }
  0x5c   : > { %4870 = vmatpush3.bf16.msra.mxu0 %v5421_v30  ;;  %v184_v30 = vld [vmem:[%s5955_s7 + $0x70] sm:$0xff] }
  0x5d   : > { %4892 = vmatpush3.bf16.msra.mxu1 %v5422_v31  ;;  %4871 = vmatprep.subr.bf16.mxu0 %v5423_v32  ;;  %v232_v31 = vpack.c.bf16 %v184_v30, %v184_v30  ;;  %v5471_v32 = vld [vmem:[%s7130_s1 + $0x440] sm:$0xff]   ;;  %v5525_v30 = vld [vmem:[%s7130_s1 + $0x528] sm:$0xff]  }
  0x5e   : > { %4893 = vmatprep.subr.bf16.mxu1 %v5424_v33  ;;  %v5472_v33 = vld [vmem:[%s7130_s1 + $0x4c0] sm:$0xff]  }
  0x60   : > { %4872 = vmatpush3.bf16.msra.mxu0 %v5425_v34  ;;  %v5473_v34 = vld [vmem:[%s7130_s1 + $0x400] sm:$0xff]  }
  0x61   : > { %4894 = vmatpush3.bf16.msra.mxu1 %v5426_v35  ;;  %4873 = vmatprep.subr.bf16.mxu0 %v5427_v36  ;;  %v5474_v35 = vld [vmem:[%s7130_s1 + $0x480] sm:$0xff]   ;;  %v5475_v36 = vld [vmem:[%s7130_s1 + $0x448] sm:$0xff]  }
  0x62   : > { %4895 = vmatprep.subr.bf16.mxu1 %v5428_v37  ;;  %v5476_v37 = vld [vmem:[%s7130_s1 + $0x4c8] sm:$0xff]  }
  0x64   : > { %4874 = vmatpush3.bf16.msra.mxu0 %v5429_v38  ;;  %v5477_v38 = vld [vmem:[%s7130_s1 + $0x408] sm:$0xff]  }
  0x65   : > { %4896 = vmatpush3.bf16.msra.mxu1 %v5430_v39  ;;  %4875 = vmatprep.subr.bf16.mxu0 %v5431_v40  ;;  %v5478_v39 = vld [vmem:[%s7130_s1 + $0x488] sm:$0xff]   ;;  %v5479_v40 = vld [vmem:[%s7130_s1 + $0x450] sm:$0xff]  }
  0x66   : > { %4897 = vmatprep.subr.bf16.mxu1 %v5432_v41  ;;  %v5480_v41 = vld [vmem:[%s7130_s1 + $0x4d0] sm:$0xff]  }
  0x68   : > { %4876 = vmatpush3.bf16.msra.mxu0 %v5433_v42  ;;  %v5481_v42 = vld [vmem:[%s7130_s1 + $0x410] sm:$0xff]  }
  0x69   : > { %4898 = vmatpush3.bf16.msra.mxu1 %v5434_v43  ;;  %4877 = vmatprep.subr.bf16.mxu0 %v5435_v44  ;;  %v5482_v43 = vld [vmem:[%s7130_s1 + $0x490] sm:$0xff]   ;;  %v5483_v44 = vld [vmem:[%s7130_s1 + $0x458] sm:$0xff]  }
  0x6a   : > { %4899 = vmatprep.subr.bf16.mxu1 %v5436_v45  ;;  %v5484_v45 = vld [vmem:[%s7130_s1 + $0x4d8] sm:$0xff]  }
  0x6c   : > { %4878 = vmatpush3.bf16.msra.mxu0 %v5437_v46  ;;  %v5485_v46 = vld [vmem:[%s7130_s1 + $0x418] sm:$0xff]  }
  0x6d   : > { %4900 = vmatpush3.bf16.msra.mxu1 %v5438_v47  ;;  %4907 = vmatprep.subr.bf16.mxu0 %v5439_v56  ;;  %v5486_v47 = vld [vmem:[%s7130_s1 + $0x498] sm:$0xff]   ;;  %v5495_v56 = vld [vmem:[%s7130_s1 + $0x470] sm:$0xff]  }
  0x6e   : > { %4929 = vmatprep.subr.bf16.mxu1 %v5440_v57  ;;  %v5496_v57 = vld [vmem:[%s7130_s1 + $0x4f0] sm:$0xff]  }
  0x6f   : > { %3538 = vmatmul.mubr.bf16.vlgmr.msra.gmra.mrb[8].mxu0 %v226_v54  ;;  %v5493_v54 = vld [vmem:[%s7130_s1 + $0x428] sm:$0xff]  }
  0x70   : > { %3578 = vmatmul.mubr.bf16.vlgmr.msra.gmra.mrb[8].mxu1 %v228_v55  ;;  %4908 = vmatpush3.bf16.msra.mxu0 %v5441_v58  ;;  %v5494_v55 = vld [vmem:[%s7130_s1 + $0x4a8] sm:$0xff]   ;;  %v5497_v58 = vld [vmem:[%s7130_s1 + $0x430] sm:$0xff]  }
  0x71   : > { %4930 = vmatpush3.bf16.msra.mxu1 %v5442_v59  ;;  %4909 = vmatprep.subr.bf16.mxu0 %v5443_v60  ;;  %v5498_v59 = vld [vmem:[%s7130_s1 + $0x4b0] sm:$0xff]   ;;  %v5499_v60 = vld [vmem:[%s7130_s1 + $0x478] sm:$0xff]  }
  0x72   : > { %4931 = vmatprep.subr.bf16.mxu1 %v5444_v61  ;;  %3617 = vmatprep.mubr.bf16.mxu0 %v231_v27  ;;  %v5500_v61 = vld [vmem:[%s7130_s1 + $0x4f8] sm:$0xff]   ;;  %v5522_v27 = vld [vmem:[%s7130_s1 + $0x5a0] sm:$0xff]  }
  0x73   : > { %3657 = vmatprep.mubr.bf16.mxu1 %v233_v28  ;;  %v5523_v28 = vld [vmem:[%s7130_s1 + $0x568] sm:$0xff]  }
  0x74   : > { %4910 = vmatpush3.bf16.msra.mxu0 %v5445_v62  ;;  %v5501_v62 = vld [vmem:[%s7130_s1 + $0x438] sm:$0xff]  }
  0x75   : > { %4932 = vmatpush3.bf16.msra.mxu1 %v5446_v63  ;;  %4911 = vmatprep.subr.bf16.mxu0 %v5447_v0  ;;  %v5502_v63 = vld [vmem:[%s7130_s1 + $0x4b8] sm:$0xff]   ;;  %v187_v0 = vld [vmem:[%s5955_s7 + $0x88] sm:$0xff] }
  0x76   : > { %4933 = vmatprep.subr.bf16.mxu1 %v5448_v1  ;;  %v189_v1 = vld [vmem:[%s5955_s7 + $0x98] sm:$0xff] }
  0x78   : > { %4912 = vmatpush3.bf16.msra.mxu0 %v5449_v2  ;;  %v235_v2 = vpack.c.bf16 %v187_v0, %v187_v0  ;;  %v5551_v0 = vld [vmem:[%s7130_s1 + $0x660] sm:$0xff]  }
  0x79   : > { %4934 = vmatpush3.bf16.msra.mxu1 %v5450_v3  ;;  %4913 = vmatprep.subr.bf16.mxu0 %v5451_v4  ;;  %v237_v3 = vpack.c.bf16 %v189_v1, %v189_v1  ;;  %v186_v4 = vld [vmem:[%s5955_s7 + $0x80] sm:$0xff] }
  0x7a   : > { %4935 = vmatprep.subr.bf16.mxu1 %v5452_v5  ;;  %v188_v5 = vld [vmem:[%s5955_s7 + $0x90] sm:$0xff]  ;;  %v5552_v1 = vld [vmem:[%s7130_s1 + $0x6e0] sm:$0xff]  }
  0x7c   : > { %4914 = vmatpush3.bf16.msra.mxu0 %v5453_v6  ;;  %v234_v6 = vpack.c.bf16 %v186_v4, %v186_v4  ;;  %v5555_v4 = vld [vmem:[%s7130_s1 + $0x668] sm:$0xff]  }
  0x7d   : > { %4936 = vmatpush3.bf16.msra.mxu1 %v5454_v7  ;;  %4915 = vmatprep.subr.bf16.mxu0 %v5455_v8  ;;  %v236_v7 = vpack.c.bf16 %v188_v5, %v188_v5  ;;  %v5503_v8 = vld [vmem:[%s7130_s1 + $0x540] sm:$0xff]   ;;  %v5556_v5 = vld [vmem:[%s7130_s1 + $0x6e8] sm:$0xff]  }
  0x7e   : > { %4937 = vmatprep.subr.bf16.mxu1 %v5456_v9  ;;  %v5504_v9 = vld [vmem:[%s7130_s1 + $0x5c0] sm:$0xff]  }
  0x80   : > { %4916 = vmatpush3.bf16.msra.mxu0 %v5457_v10  ;;  %v5505_v10 = vld [vmem:[%s7130_s1 + $0x500] sm:$0xff]  }
  0x81   : > { %4938 = vmatpush3.bf16.msra.mxu1 %v5458_v11  ;;  %4917 = vmatprep.subr.bf16.mxu0 %v5459_v12  ;;  %v5506_v11 = vld [vmem:[%s7130_s1 + $0x580] sm:$0xff]   ;;  %v5507_v12 = vld [vmem:[%s7130_s1 + $0x548] sm:$0xff]  }
  0x82   : > { %4939 = vmatprep.subr.bf16.mxu1 %v5460_v13  ;;  %v5508_v13 = vld [vmem:[%s7130_s1 + $0x5c8] sm:$0xff]  }
  0x84   : > { %4918 = vmatpush3.bf16.msra.mxu0 %v5461_v14  ;;  %v5509_v14 = vld [vmem:[%s7130_s1 + $0x508] sm:$0xff]  }
  0x85   : > { %4940 = vmatpush3.bf16.msra.mxu1 %v5462_v15  ;;  %4919 = vmatprep.subr.bf16.mxu0 %v5463_v16  ;;  %v5510_v15 = vld [vmem:[%s7130_s1 + $0x588] sm:$0xff]   ;;  %v5511_v16 = vld [vmem:[%s7130_s1 + $0x550] sm:$0xff]  }
  0x86   : > { %4941 = vmatprep.subr.bf16.mxu1 %v5464_v17  ;;  %v5512_v17 = vld [vmem:[%s7130_s1 + $0x5d0] sm:$0xff]  }
  0x88   : > { %4920 = vmatpush3.bf16.msra.mxu0 %v5465_v18  ;;  %v5513_v18 = vld [vmem:[%s7130_s1 + $0x510] sm:$0xff]  }
  0x89   : > { %4942 = vmatpush3.bf16.msra.mxu1 %v5466_v19  ;;  %4921 = vmatprep.subr.bf16.mxu0 %v5467_v20  ;;  %v5514_v19 = vld [vmem:[%s7130_s1 + $0x590] sm:$0xff]   ;;  %v5515_v20 = vld [vmem:[%s7130_s1 + $0x558] sm:$0xff]  }
  0x8a   : > { %4943 = vmatprep.subr.bf16.mxu1 %v5468_v21  ;;  %v5516_v21 = vld [vmem:[%s7130_s1 + $0x5d8] sm:$0xff]  }
  0x8c   : > { %4922 = vmatpush3.bf16.msra.mxu0 %v5469_v22  ;;  %v5517_v22 = vld [vmem:[%s7130_s1 + $0x518] sm:$0xff]  }
  0x8d   : > { %4944 = vmatpush3.bf16.msra.mxu1 %v5470_v23  ;;  %4951 = vmatprep.subr.bf16.mxu0 %v5471_v32  ;;  %v5518_v23 = vld [vmem:[%s7130_s1 + $0x598] sm:$0xff]   ;;  %v5527_v32 = vld [vmem:[%s7130_s1 + $0x570] sm:$0xff]  }
  0x8e   : > { %4973 = vmatprep.subr.bf16.mxu1 %v5472_v33  ;;  %v5528_v33 = vld [vmem:[%s7130_s1 + $0x5f0] sm:$0xff]  }
  0x8f   : > { %3618 = vmatmul.mubr.bf16.vlgmr.msra.gmra.mrb[12].mxu0 %v230_v29  ;;  %v5524_v29 = vld [vmem:[%s7130_s1 + $0x5e8] sm:$0xff]  }
  0x90   : > { %3658 = vmatmul.mubr.bf16.vlgmr.msra.gmra.mrb[12].mxu1 %v232_v31  ;;  %4952 = vmatpush3.bf16.msra.mxu0 %v5473_v34  ;;  %v5526_v31 = vld [vmem:[%s7130_s1 + $0x5a8] sm:$0xff]   ;;  %v5529_v34 = vld [vmem:[%s7130_s1 + $0x530] sm:$0xff]  }
  0x91   : > { %4974 = vmatpush3.bf16.msra.mxu1 %v5474_v35  ;;  %4953 = vmatprep.subr.bf16.mxu0 %v5475_v36  ;;  %v5530_v35 = vld [vmem:[%s7130_s1 + $0x5b0] sm:$0xff]   ;;  %v5531_v36 = vld [vmem:[%s7130_s1 + $0x578] sm:$0xff]  }
  0x92   : > { %4975 = vmatprep.subr.bf16.mxu1 %v5476_v37  ;;  %3697 = vmatprep.mubr.bf16.mxu0 %v235_v2  ;;  %v5532_v37 = vld [vmem:[%s7130_s1 + $0x5f8] sm:$0xff]   ;;  %v5553_v2 = vld [vmem:[%s7130_s1 + $0x620] sm:$0xff]  }
  0x93   : > { %3737 = vmatprep.mubr.bf16.mxu1 %v237_v3  ;;  %v5554_v3 = vld [vmem:[%s7130_s1 + $0x6a0] sm:$0xff]  }
  0x94   : > { %4954 = vmatpush3.bf16.msra.mxu0 %v5477_v38  ;;  %v5533_v38 = vld [vmem:[%s7130_s1 + $0x538] sm:$0xff]  }
  0x95   : > { %4976 = vmatpush3.bf16.msra.mxu1 %v5478_v39  ;;  %4955 = vmatprep.subr.bf16.mxu0 %v5479_v40  ;;  %v5534_v39 = vld [vmem:[%s7130_s1 + $0x5b8] sm:$0xff]   ;;  %v191_v40 = vld [vmem:[%s5955_s7 + $0xa8] sm:$0xff] }
  0x96   : > { %4977 = vmatprep.subr.bf16.mxu1 %v5480_v41  ;;  %v239_v41 = vpack.c.bf16 %v191_v40, %v191_v40 }
  0x98   : > { %4956 = vmatpush3.bf16.msra.mxu0 %v5481_v42  ;;  %v193_v42 = vld [vmem:[%s5955_s7 + $0xb8] sm:$0xff] }
  0x99   : > { %4978 = vmatpush3.bf16.msra.mxu1 %v5482_v43  ;;  %4957 = vmatprep.subr.bf16.mxu0 %v5483_v44  ;;  %v190_v43 = vld [vmem:[%s5955_s7 + $0xa0] sm:$0xff]  ;;  %v192_v44 = vld [vmem:[%s5955_s7 + $0xb0] sm:$0xff] }
  0x9a   : > { %4979 = vmatprep.subr.bf16.mxu1 %v5484_v45  ;;  %v241_v45 = vpack.c.bf16 %v193_v42, %v193_v42 }
  0x9c   : > { %4958 = vmatpush3.bf16.msra.mxu0 %v5485_v46  ;;  %v238_v46 = vpack.c.bf16 %v190_v43, %v190_v43  ;;  %v5583_v43 = vld [vmem:[%s7130_s1 + $0x760] sm:$0xff]  }
  0x9d   : > { %4980 = vmatpush3.bf16.msra.mxu1 %v5486_v47  ;;  %4959 = vmatprep.subr.bf16.mxu0 %v5487_v48  ;;  %v240_v47 = vpack.c.bf16 %v192_v44, %v192_v44  ;;  %v5535_v48 = vld [vmem:[%s7130_s1 + $0x640] sm:$0xff]  }
  0x9e   : > { %4981 = vmatprep.subr.bf16.mxu1 %v5488_v49  ;;  %v5536_v49 = vld [vmem:[%s7130_s1 + $0x6c0] sm:$0xff]  }
  0xa0   : > { %4960 = vmatpush3.bf16.msra.mxu0 %v5489_v50  ;;  %v5537_v50 = vld [vmem:[%s7130_s1 + $0x600] sm:$0xff]  }
  0xa1   : > { %4982 = vmatpush3.bf16.msra.mxu1 %v5490_v51  ;;  %4961 = vmatprep.subr.bf16.mxu0 %v5491_v52  ;;  %v5538_v51 = vld [vmem:[%s7130_s1 + $0x680] sm:$0xff]   ;;  %v5539_v52 = vld [vmem:[%s7130_s1 + $0x648] sm:$0xff]  }
  0xa2   : > { %4983 = vmatprep.subr.bf16.mxu1 %v5492_v53  ;;  %v5540_v53 = vld [vmem:[%s7130_s1 + $0x6c8] sm:$0xff]  }
  0xa4   : > { %4962 = vmatpush3.bf16.msra.mxu0 %v5493_v54  ;;  %v5541_v54 = vld [vmem:[%s7130_s1 + $0x608] sm:$0xff]  }
  0xa5   : > { %4984 = vmatpush3.bf16.msra.mxu1 %v5494_v55  ;;  %4963 = vmatprep.subr.bf16.mxu0 %v5495_v56  ;;  %v5542_v55 = vld [vmem:[%s7130_s1 + $0x688] sm:$0xff]   ;;  %v5543_v56 = vld [vmem:[%s7130_s1 + $0x650] sm:$0xff]  }
  0xa6   : > { %4985 = vmatprep.subr.bf16.mxu1 %v5496_v57  ;;  %v5544_v57 = vld [vmem:[%s7130_s1 + $0x6d0] sm:$0xff]  }
  0xa8   : > { %4964 = vmatpush3.bf16.msra.mxu0 %v5497_v58  ;;  %v5545_v58 = vld [vmem:[%s7130_s1 + $0x610] sm:$0xff]  }
  0xa9   : > { %4986 = vmatpush3.bf16.msra.mxu1 %v5498_v59  ;;  %4965 = vmatprep.subr.bf16.mxu0 %v5499_v60  ;;  %v5546_v59 = vld [vmem:[%s7130_s1 + $0x690] sm:$0xff]   ;;  %v5547_v60 = vld [vmem:[%s7130_s1 + $0x658] sm:$0xff]  }
  0xaa   : > { %4987 = vmatprep.subr.bf16.mxu1 %v5500_v61  ;;  %v5548_v61 = vld [vmem:[%s7130_s1 + $0x6d8] sm:$0xff]  }
  0xac   : > { %4966 = vmatpush3.bf16.msra.mxu0 %v5501_v62  ;;  %v5549_v62 = vld [vmem:[%s7130_s1 + $0x618] sm:$0xff]  }
  0xad   : > { %4988 = vmatpush3.bf16.msra.mxu1 %v5502_v63  ;;  %4995 = vmatprep.subr.bf16.mxu0 %v5503_v8  ;;  %v5550_v63 = vld [vmem:[%s7130_s1 + $0x698] sm:$0xff]   ;;  %v5559_v8 = vld [vmem:[%s7130_s1 + $0x670] sm:$0xff]  }
  0xae   : > { %5017 = vmatprep.subr.bf16.mxu1 %v5504_v9  ;;  %v5560_v9 = vld [vmem:[%s7130_s1 + $0x6f0] sm:$0xff]  }
  0xaf   : > { %3698 = vmatmul.mubr.bf16.vlgmr.msra.gmra.mrb[16].mxu0 %v234_v6  ;;  %v5557_v6 = vld [vmem:[%s7130_s1 + $0x628] sm:$0xff]  }
  0xb0   : > { %3738 = vmatmul.mubr.bf16.vlgmr.msra.gmra.mrb[16].mxu1 %v236_v7  ;;  %4996 = vmatpush3.bf16.msra.mxu0 %v5505_v10  ;;  %v5558_v7 = vld [vmem:[%s7130_s1 + $0x6a8] sm:$0xff]   ;;  %v5561_v10 = vld [vmem:[%s7130_s1 + $0x630] sm:$0xff]  }
  0xb1   : > { %5018 = vmatpush3.bf16.msra.mxu1 %v5506_v11  ;;  %4997 = vmatprep.subr.bf16.mxu0 %v5507_v12  ;;  %v5562_v11 = vld [vmem:[%s7130_s1 + $0x6b0] sm:$0xff]   ;;  %v5563_v12 = vld [vmem:[%s7130_s1 + $0x678] sm:$0xff]  }
  0xb2   : > { %5019 = vmatprep.subr.bf16.mxu1 %v5508_v13  ;;  %3777 = vmatprep.mubr.bf16.mxu0 %v239_v41  ;;  %v5564_v13 = vld [vmem:[%s7130_s1 + $0x6f8] sm:$0xff]  }
  0xb3   : > { %3817 = vmatprep.mubr.bf16.mxu1 %v241_v45  ;;  %v5582_v41 = vld [vmem:[%s7130_s1 + $0x798] sm:$0xff]  }
  0xb4   : > { %4998 = vmatpush3.bf16.msra.mxu0 %v5509_v14  ;;  %v5565_v14 = vld [vmem:[%s7130_s1 + $0x638] sm:$0xff]  }
  0xb5   : > { %5020 = vmatpush3.bf16.msra.mxu1 %v5510_v15  ;;  %4999 = vmatprep.subr.bf16.mxu0 %v5511_v16  ;;  %v5566_v15 = vld [vmem:[%s7130_s1 + $0x6b8] sm:$0xff]   ;;  %v195_v16 = vld [vmem:[%s5955_s7 + $0xc8] sm:$0xff] }
  0xb6   : > { %5021 = vmatprep.subr.bf16.mxu1 %v5512_v17  ;;  %v197_v17 = vld [vmem:[%s5955_s7 + $0xd8] sm:$0xff] }
  0xb8   : > { %5000 = vmatpush3.bf16.msra.mxu0 %v5513_v18  ;;  %v194_v18 = vld [vmem:[%s5955_s7 + $0xc0] sm:$0xff] }
  0xb9   : > { %5022 = vmatpush3.bf16.msra.mxu1 %v5514_v19  ;;  %5001 = vmatprep.subr.bf16.mxu0 %v5515_v20  ;;  %v243_v19 = vpack.c.bf16 %v195_v16, %v195_v16  ;;  %v245_v20 = vpack.c.bf16 %v197_v17, %v197_v17  ;;  %v5602_v16 = vld [vmem:[%s7130_s1 + $0x880] sm:$0xff]   ;;  %v5603_v17 = vld [vmem:[%s7130_s1 + $0x848] sm:$0xff]  }
  0xba   : > { %5023 = vmatprep.subr.bf16.mxu1 %v5516_v21  ;;  %v242_v21 = vpack.c.bf16 %v194_v18, %v194_v18  ;;  %v5604_v18 = vld [vmem:[%s7130_s1 + $0x8c8] sm:$0xff]  }
  0xbc   : > { %5002 = vmatpush3.bf16.msra.mxu0 %v5517_v22  ;;  %v196_v22 = vld [vmem:[%s5955_s7 + $0xd0] sm:$0xff] }
  0xbd   : > { %5024 = vmatpush3.bf16.msra.mxu1 %v5518_v23  ;;  %5003 = vmatprep.subr.bf16.mxu0 %v5519_v24  ;;  %v244_v23 = vpack.c.bf16 %v196_v22, %v196_v22  ;;  %v5567_v24 = vld [vmem:[%s7130_s1 + $0x740] sm:$0xff]   ;;  %v5608_v22 = vld [vmem:[%s7130_s1 + $0x8d0] sm:$0xff]  }
  0xbe   : > { %5025 = vmatprep.subr.bf16.mxu1 %v5520_v25  ;;  %v5568_v25 = vld [vmem:[%s7130_s1 + $0x7c0] sm:$0xff]  }
  0xc0   : > { %5004 = vmatpush3.bf16.msra.mxu0 %v5521_v26  ;;  %v5569_v26 = vld [vmem:[%s7130_s1 + $0x700] sm:$0xff]  }
  0xc1   : > { %5026 = vmatpush3.bf16.msra.mxu1 %v5522_v27  ;;  %5005 = vmatprep.subr.bf16.mxu0 %v5523_v28  ;;  %v5570_v27 = vld [vmem:[%s7130_s1 + $0x780] sm:$0xff]   ;;  %v5571_v28 = vld [vmem:[%s7130_s1 + $0x748] sm:$0xff]  }
  0xc2   : > { %5027 = vmatprep.subr.bf16.mxu1 %v5524_v29  ;;  %v5572_v29 = vld [vmem:[%s7130_s1 + $0x7c8] sm:$0xff]  }
  0xc4   : > { %5006 = vmatpush3.bf16.msra.mxu0 %v5525_v30  ;;  %v5573_v30 = vld [vmem:[%s7130_s1 + $0x708] sm:$0xff]  }
  0xc5   : > { %5028 = vmatpush3.bf16.msra.mxu1 %v5526_v31  ;;  %5007 = vmatprep.subr.bf16.mxu0 %v5527_v32  ;;  %v5574_v31 = vld [vmem:[%s7130_s1 + $0x788] sm:$0xff]   ;;  %v5575_v32 = vld [vmem:[%s7130_s1 + $0x750] sm:$0xff]  }
  0xc6   : > { %5029 = vmatprep.subr.bf16.mxu1 %v5528_v33  ;;  %v5576_v33 = vld [vmem:[%s7130_s1 + $0x7d0] sm:$0xff]  }
  0xc8   : > { %5008 = vmatpush3.bf16.msra.mxu0 %v5529_v34  ;;  %v5577_v34 = vld [vmem:[%s7130_s1 + $0x710] sm:$0xff]  }
  0xc9   : > { %5030 = vmatpush3.bf16.msra.mxu1 %v5530_v35  ;;  %5009 = vmatprep.subr.bf16.mxu0 %v5531_v36  ;;  %v5578_v35 = vld [vmem:[%s7130_s1 + $0x790] sm:$0xff]   ;;  %v5579_v36 = vld [vmem:[%s7130_s1 + $0x758] sm:$0xff]  }
  0xca   : > { %5031 = vmatprep.subr.bf16.mxu1 %v5532_v37  ;;  %v5580_v37 = vld [vmem:[%s7130_s1 + $0x7d8] sm:$0xff]  }
  0xcc   : > { %5010 = vmatpush3.bf16.msra.mxu0 %v5533_v38 }
  0xcd   : > { %5032 = vmatpush3.bf16.msra.mxu1 %v5534_v39  ;;  %5039 = vmatprep.subr.bf16.mxu0 %v5535_v48  ;;  %v5581_v39 = vld [vmem:[%s7130_s1 + $0x718] sm:$0xff]  }
  0xce   : > { %5061 = vmatprep.subr.bf16.mxu1 %v5536_v49  ;;  %v5585_v49 = vld [vmem:[%s7130_s1 + $0x720] sm:$0xff]  }
  0xcf   : > { %3778 = vmatmul.mubr.bf16.vlgmr.msra.gmra.mrb[20].mxu0 %v238_v46  ;;  %v5584_v46 = vld [vmem:[%s7130_s1 + $0x7e0] sm:$0xff]  }
  0xd0   : > { %3818 = vmatmul.mubr.bf16.vlgmr.msra.gmra.mrb[20].mxu1 %v240_v47  ;;  %5040 = vmatpush3.bf16.msra.mxu0 %v5537_v50 }
  0xd1   : > { %5062 = vmatpush3.bf16.msra.mxu1 %v5538_v51  ;;  %5041 = vmatprep.subr.bf16.mxu0 %v5539_v52  ;;  %v5586_v51 = vld [vmem:[%s7130_s1 + $0x7a0] sm:$0xff]  }
  0xd2   : > { %5063 = vmatprep.subr.bf16.mxu1 %v5540_v53  ;;  %3857 = vmatprep.mubr.bf16.mxu0 %v243_v19  ;;  %v4386_v52 = vld [vmem:[%s7131_s2] ss:$0 sm:$0xff]  ;;  %v5605_v19 = vld [vmem:[%s7130_s1 + $0x808] sm:$0xff]  }
  0xd3   : > { %3897 = vmatprep.mubr.bf16.mxu1 %v245_v20  ;;  %v5606_v20 = vld [vmem:[%s7130_s1 + $0x888] sm:$0xff]  }
  0xd4   : > { %5042 = vmatpush3.bf16.msra.mxu0 %v5541_v54 }
  0xd5   : > { %5064 = vmatpush3.bf16.msra.mxu1 %v5542_v55  ;;  %5043 = vmatprep.subr.bf16.mxu0 %v5543_v56  ;;  %v5587_v55 = vld [vmem:[%s7130_s1 + $0x768] sm:$0xff]  }
  0xd6   : > { %5065 = vmatprep.subr.bf16.mxu1 %v5544_v57  ;;  %v5588_v57 = vld [vmem:[%s7130_s1 + $0x7e8] sm:$0xff]  }
  0xd8   : > { %5044 = vmatpush3.bf16.msra.mxu0 %v5545_v58 }
  0xd9   : > { %5066 = vmatpush3.bf16.msra.mxu1 %v5546_v59  ;;  %5045 = vmatprep.subr.bf16.mxu0 %v5547_v60  ;;  %v5589_v59 = vld [vmem:[%s7130_s1 + $0x728] sm:$0xff]  }
  0xda   : > { %5067 = vmatprep.subr.bf16.mxu1 %v5548_v61  ;;  %v5590_v60 = vld [vmem:[%s7130_s1 + $0x7a8] sm:$0xff]   ;;  %v5591_v61 = vld [vmem:[%s7130_s1 + $0x770] sm:$0xff]  }
  0xdc   : > { %5046 = vmatpush3.bf16.msra.mxu0 %v5549_v62  ;;  %v5592_v62 = vld [vmem:[%s7130_s1 + $0x7f0] sm:$0xff]  }
  0xdd   : > { %5068 = vmatpush3.bf16.msra.mxu1 %v5550_v63  ;;  %5047 = vmatprep.subr.bf16.mxu0 %v5551_v0  ;;  %v5593_v63 = vld [vmem:[%s7130_s1 + $0x730] sm:$0xff]  }
  0xde   : > { %5069 = vmatprep.subr.bf16.mxu1 %v5552_v1  ;;  %v5594_v0 = vld [vmem:[%s7130_s1 + $0x7b0] sm:$0xff]   ;;  %v5595_v1 = vld [vmem:[%s7130_s1 + $0x778] sm:$0xff]  }
  0xe0   : > { %5048 = vmatpush3.bf16.msra.mxu0 %v5553_v2  ;;  %v5596_v2 = vld [vmem:[%s7130_s1 + $0x7f8] sm:$0xff]  }
  0xe1   : > { %5070 = vmatpush3.bf16.msra.mxu1 %v5554_v3  ;;  %5049 = vmatprep.subr.bf16.mxu0 %v5555_v4  ;;  %v5597_v3 = vld [vmem:[%s7130_s1 + $0x738] sm:$0xff]  }
  0xe2   : > { %5071 = vmatprep.subr.bf16.mxu1 %v5556_v5  ;;  %v5598_v4 = vld [vmem:[%s7130_s1 + $0x7b8] sm:$0xff]   ;;  %v199_v5 = vld [vmem:[%s5955_s7 + $0xe8] sm:$0xff] }
  0xe4   : > { %5050 = vmatpush3.bf16.msra.mxu0 %v5557_v6  ;;  %v247_v6 = vpack.c.bf16 %v199_v5, %v199_v5  ;;  %v5635_v5 = vld [vmem:[%s7130_s1 + $0x948] sm:$0xff]  }
  0xe5   : > { %5072 = vmatpush3.bf16.msra.mxu1 %v5558_v7  ;;  %5051 = vmatprep.subr.bf16.mxu0 %v5559_v8  ;;  %v201_v7 = vld [vmem:[%s5955_s7 + $0xf8] sm:$0xff]  ;;  %v198_v8 = vld [vmem:[%s5955_s7 + $0xe0] sm:$0xff] }
  0xe6   : > { %5073 = vmatprep.subr.bf16.mxu1 %v5560_v9  ;;  %v200_v9 = vld [vmem:[%s5955_s7 + $0xf0] sm:$0xff] }
  0xe8   : > { %5052 = vmatpush3.bf16.msra.mxu0 %v5561_v10  ;;  %v249_v10 = vpack.c.bf16 %v201_v7, %v201_v7  ;;  %v5637_v7 = vld [vmem:[%s7130_s1 + $0x908] sm:$0xff]  }
  0xe9   : > { %5074 = vmatpush3.bf16.msra.mxu1 %v5562_v11  ;;  %5053 = vmatprep.subr.bf16.mxu0 %v5563_v12  ;;  %v246_v11 = vpack.c.bf16 %v198_v8, %v198_v8  ;;  %v248_v12 = vpack.c.bf16 %v200_v9, %v200_v9  ;;  %v5638_v8 = vld [vmem:[%s7130_s1 + $0x988] sm:$0xff]   ;;  %v5639_v9 = vld [vmem:[%s7130_s1 + $0x950] sm:$0xff]  }
  0xea   : > { %5075 = vmatprep.subr.bf16.mxu1 %v5564_v13  ;;  %v5599_v13 = vld [vmem:[%s7130_s1 + $0x840] sm:$0xff]  }
  0xec   : > { %5054 = vmatpush3.bf16.msra.mxu0 %v5565_v14  ;;  %v5600_v14 = vld [vmem:[%s7130_s1 + $0x8c0] sm:$0xff]  }
  0xed   : > { %5076 = vmatpush3.bf16.msra.mxu1 %v5566_v15  ;;  %5083 = vmatprep.subr.bf16.mxu0 %v5567_v24  ;;  %v5601_v15 = vld [vmem:[%s7130_s1 + $0x800] sm:$0xff]   ;;  %v5610_v24 = vld [vmem:[%s7130_s1 + $0x890] sm:$0xff]  }
  0xee   : > { %5105 = vmatprep.subr.bf16.mxu1 %v5568_v25  ;;  %v5611_v25 = vld [vmem:[%s7130_s1 + $0x858] sm:$0xff]  }
  0xef   : > { %3858 = vmatmul.mubr.bf16.vlgmr.msra.gmra.mrb[24].mxu0 %v242_v21  ;;  %v5607_v21 = vld [vmem:[%s7130_s1 + $0x850] sm:$0xff]  }
  0xf0   : > { %3898 = vmatmul.mubr.bf16.vlgmr.msra.gmra.mrb[24].mxu1 %v244_v23  ;;  %5084 = vmatpush3.bf16.msra.mxu0 %v5569_v26  ;;  %v5609_v23 = vld [vmem:[%s7130_s1 + $0x810] sm:$0xff]   ;;  %v5612_v26 = vld [vmem:[%s7130_s1 + $0x8d8] sm:$0xff]  }
  0xf1   : > { %5106 = vmatpush3.bf16.msra.mxu1 %v5570_v27  ;;  %5085 = vmatprep.subr.bf16.mxu0 %v5571_v28  ;;  %v5613_v28 = vld [vmem:[%s7130_s1 + $0x818] sm:$0xff]  }
  0xf2   : > { %5107 = vmatprep.subr.bf16.mxu1 %v5572_v29  ;;  %3937 = vmatprep.mubr.bf16.mxu0 %v247_v6  ;;  %v5636_v6 = vld [vmem:[%s7130_s1 + $0x9c8] sm:$0xff]  }
  0xf3   : > { %3977 = vmatprep.mubr.bf16.mxu1 %v249_v10  ;;  %v5640_v10 = vld [vmem:[%s7130_s1 + $0x9d0] sm:$0xff]  }
  0xf4   : > { %5086 = vmatpush3.bf16.msra.mxu0 %v5573_v30  ;;  %v5614_v30 = vld [vmem:[%s7130_s1 + $0x898] sm:$0xff]  }
  0xf5   : > { %5108 = vmatpush3.bf16.msra.mxu1 %v5574_v31  ;;  %5087 = vmatprep.subr.bf16.mxu0 %v5575_v32  ;;  %v5615_v32 = vld [vmem:[%s7130_s1 + $0x860] sm:$0xff]  }
  0xf6   : > { %5109 = vmatprep.subr.bf16.mxu1 %v5576_v33 }
  0xf8   : > { %5088 = vmatpush3.bf16.msra.mxu0 %v5577_v34 }
  0xf9   : > { %5110 = vmatpush3.bf16.msra.mxu1 %v5578_v35  ;;  %5089 = vmatprep.subr.bf16.mxu0 %v5579_v36  ;;  %v5616_v35 = vld [vmem:[%s7130_s1 + $0x8e0] sm:$0xff]  }
  0xfa   : > { %5111 = vmatprep.subr.bf16.mxu1 %v5580_v37 }
  0xfc   : > { %5090 = vmatpush3.bf16.msra.mxu0 %v5581_v39 }
  0xfd   : > { %5112 = vmatpush3.bf16.msra.mxu1 %v5582_v41  ;;  %5091 = vmatprep.subr.bf16.mxu0 %v5583_v43  ;;  %v5618_v41 = vld [vmem:[%s7130_s1 + $0x8a0] sm:$0xff]  }
  0xfe   : > { %5113 = vmatprep.subr.bf16.mxu1 %v5584_v46  ;;  %v5620_v46 = vld [vmem:[%s7130_s1 + $0x8e8] sm:$0xff]  }
 0x100   : > { %5092 = vmatpush3.bf16.msra.mxu0 %v5585_v49  ;;  %v5623_v49 = vld [vmem:[%s7130_s1 + $0x870] sm:$0xff]  }
 0x101   : > { %5114 = vmatpush3.bf16.msra.mxu1 %v5586_v51  ;;  %5093 = vmatprep.subr.bf16.mxu0 %v5587_v55  ;;  %v5625_v51 = vld [vmem:[%s7130_s1 + $0x830] sm:$0xff]   ;;  %v5629_v55 = vld [vmem:[%s7130_s1 + $0x838] sm:$0xff]  }
 0x102   : > { %v4791_v38 = vpop.f32.mrb[0].mxu0  ;;  %5115 = vmatprep.subr.bf16.mxu1 %v5588_v57  ;;  %v203_v57 = vld [vmem:[%s5955_s7 + $0x108] sm:$0xff] }
 0x103   : > { %v4813_v40 = vpop.f32.mrb[0].mxu1  ;;  %v4792_v42 = vpop.f32.mrb[1].mxu0 }
 0x104   : > { %v4793_v44 = vadd.f32 %v4792_v42, %v4791_v38  ;;  %v4814_v45 = vpop.f32.mrb[1].mxu1  ;;  %v4794_v48 = vpop.f32.mrb[2].mxu0  ;;  %5094 = vmatpush3.bf16.msra.mxu0 %v5589_v59  ;;  %v5617_v38 = vld [vmem:[%s7130_s1 + $0x820] sm:$0xff]  }
 0x105   : > { %v4815_v47 = vadd.f32 %v4814_v45, %v4813_v40  ;;  %v4816_v50 = vpop.f32.mrb[2].mxu1  ;;  %v4795_v53 = vpop.f32.mrb[3].mxu0  ;;  %5116 = vmatpush3.bf16.msra.mxu1 %v5590_v60  ;;  %5095 = vmatprep.subr.bf16.mxu0 %v5591_v61  ;;  %v5622_v48 = vld [vmem:[%s7130_s1 + $0x8a8] sm:$0xff]   ;;  %v202_v59 = vld [vmem:[%s5955_s7 + $0x100] sm:$0xff]  ;;  %v251_v60 = vpack.c.bf16 %v203_v57, %v203_v57 }
 0x106   : > { %v3380_v54 = vadd.f32 %v4793_v44, %v4386_v52  ;;  %v4817_v56 = vpop.f32.mrb[3].mxu1  ;;  %5117 = vmatprep.subr.bf16.mxu1 %v5592_v62  ;;  %v5619_v44 = vld [vmem:[%s7130_s1 + $0x868] sm:$0xff]   ;;  %v5624_v50 = vld [vmem:[%s7130_s1 + $0x8f0] sm:$0xff]   ;;  %v5627_v53 = vld [vmem:[%s7130_s1 + $0x878] sm:$0xff]   ;;  %v250_v62 = vpack.c.bf16 %v202_v59, %v202_v59 }
 0x107   : > { %v5626_v52 = vld [vmem:[%s7130_s1 + $0x8b0] sm:$0xff]   ;;  %v5630_v56 = vld [vmem:[%s7130_s1 + $0x8b8] sm:$0xff]   ;;  %v5667_v57 = vld [vmem:[%s7130_s1 + $0xa48] sm:$0xff]  }
 0x108   : > { %v6636_v58 = vadd.f32 %v4815_v47, %v3380_v54  ;;  %5096 = vmatpush3.bf16.msra.mxu0 %v5593_v63  ;;  %v5621_v47 = vld [vmem:[%s7130_s1 + $0x828] sm:$0xff]   ;;  %v5628_v54 = vld [vmem:[%s7130_s1 + $0x8f8] sm:$0xff]   ;;  %v204_v63 = vld [vmem:[%s5955_s7 + $0x110] sm:$0xff] }
 0x109   : > { %5118 = vmatpush3.bf16.msra.mxu1 %v5594_v0  ;;  %5097 = vmatprep.subr.bf16.mxu0 %v5595_v1  ;;  %v252_v0 = vpack.c.bf16 %v204_v63, %v204_v63  ;;  %v5631_v1 = vld [vmem:[%s7130_s1 + $0x940] sm:$0xff]   ;;  %v5669_v59 = vld [vmem:[%s7130_s1 + $0xa08] sm:$0xff]   ;;  %v5673_v63 = vld [vmem:[%s7130_s1 + $0xa10] sm:$0xff]  }
 0x10a   : > { %5119 = vmatprep.subr.bf16.mxu1 %v5596_v2  ;;  %v5632_v2 = vld [vmem:[%s7130_s1 + $0x9c0] sm:$0xff]  }
 0x10c   : > { %5098 = vmatpush3.bf16.msra.mxu0 %v5597_v3  ;;  %v5633_v3 = vld [vmem:[%s7130_s1 + $0x900] sm:$0xff]  }
 0x10d   : > { %5120 = vmatpush3.bf16.msra.mxu1 %v5598_v4  ;;  %5127 = vmatprep.subr.bf16.mxu0 %v5599_v13  ;;  %v5634_v4 = vld [vmem:[%s7130_s1 + $0x980] sm:$0xff]   ;;  %v5643_v13 = vld [vmem:[%s7130_s1 + $0x958] sm:$0xff]  }
 0x10e   : > { %5149 = vmatprep.subr.bf16.mxu1 %v5600_v14 }
 0x10f   : > { %3938 = vmatmul.mubr.bf16.vlgmr.msra.gmra.mrb[28].mxu0 %v246_v11  ;;  %v5641_v11 = vld [vmem:[%s7130_s1 + $0x910] sm:$0xff]  }
 0x110   : > { %3978 = vmatmul.mubr.bf16.vlgmr.msra.gmra.mrb[28].mxu1 %v248_v12  ;;  %5128 = vmatpush3.bf16.msra.mxu0 %v5601_v15  ;;  %v5642_v12 = vld [vmem:[%s7130_s1 + $0x990] sm:$0xff]   ;;  %v5644_v15 = vld [vmem:[%s7130_s1 + $0x9d8] sm:$0xff]  }
 0x111   : > { %5150 = vmatpush3.bf16.msra.mxu1 %v5602_v16  ;;  %5129 = vmatprep.subr.bf16.mxu0 %v5603_v17  ;;  %v5645_v17 = vld [vmem:[%s7130_s1 + $0x918] sm:$0xff]  }
 0x112   : > { %5151 = vmatprep.subr.bf16.mxu1 %v5604_v18  ;;  %4017 = vmatprep.mubr.bf16.mxu0 %v251_v60  ;;  %v5670_v60 = vld [vmem:[%s7130_s1 + $0xa88] sm:$0xff]  }
 0x114   : > { %5130 = vmatpush3.bf16.msra.mxu0 %v5605_v19  ;;  %v5646_v19 = vld [vmem:[%s7130_s1 + $0x998] sm:$0xff]  }
 0x115   : > { %5152 = vmatpush3.bf16.msra.mxu1 %v5606_v20  ;;  %5131 = vmatprep.subr.bf16.mxu0 %v5607_v21 }
 0x116   : > { %5153 = vmatprep.subr.bf16.mxu1 %v5608_v22  ;;  %v5647_v22 = vld [vmem:[%s7130_s1 + $0x960] sm:$0xff]  }
 0x118   : > { %5132 = vmatpush3.bf16.msra.mxu0 %v5609_v23 }
 0x119   : > { %5154 = vmatpush3.bf16.msra.mxu1 %v5610_v24  ;;  %5133 = vmatprep.subr.bf16.mxu0 %v5611_v25  ;;  %v5648_v25 = vld [vmem:[%s7130_s1 + $0x9e0] sm:$0xff]  }
 0x11a   : > { %5155 = vmatprep.subr.bf16.mxu1 %v5612_v26 }
 0x11c   : > { %5134 = vmatpush3.bf16.msra.mxu0 %v5613_v28  ;;  %v5649_v28 = vld [vmem:[%s7130_s1 + $0x920] sm:$0xff]  }
 0x11d   : > { %5156 = vmatpush3.bf16.msra.mxu1 %v5614_v30  ;;  %5135 = vmatprep.subr.bf16.mxu0 %v5615_v32  ;;  %v5650_v30 = vld [vmem:[%s7130_s1 + $0x9a0] sm:$0xff]  }
 0x11e   : > { %5157 = vmatprep.subr.bf16.mxu1 %v5616_v35  ;;  %v5653_v35 = vld [vmem:[%s7130_s1 + $0x928] sm:$0xff]  }
 0x120   : > { %5136 = vmatpush3.bf16.msra.mxu0 %v5617_v38  ;;  %v5656_v38 = vld [vmem:[%s7130_s1 + $0x9f0] sm:$0xff]  }
 0x121   : > { %5158 = vmatpush3.bf16.msra.mxu1 %v5618_v41  ;;  %5137 = vmatprep.subr.bf16.mxu0 %v5619_v44  ;;  %v5659_v41 = vld [vmem:[%s7130_s1 + $0x978] sm:$0xff]  }
 0x122   : > { %v4835_v27 = vpop.f32.mrb[4].mxu0  ;;  %5159 = vmatprep.subr.bf16.mxu1 %v5620_v46  ;;  %v5662_v44 = vld [vmem:[%s7130_s1 + $0x9b8] sm:$0xff]  }
 0x123   : > { %v4857_v29 = vpop.f32.mrb[4].mxu1  ;;  %v4836_v31 = vpop.f32.mrb[5].mxu0  ;;  %v209_v46 = vld [vmem:[%s5955_s7 + $0x138] sm:$0xff] }
 0x124   : > { %v4837_v33 = vadd.f32 %v4836_v31, %v4835_v27  ;;  %v4858_v34 = vpop.f32.mrb[5].mxu1  ;;  %v4838_v37 = vpop.f32.mrb[6].mxu0  ;;  %5138 = vmatpush3.bf16.msra.mxu0 %v5621_v47 }
 0x125   : > { %v4859_v36 = vadd.f32 %v4858_v34, %v4857_v29  ;;  %v4860_v40 = vpop.f32.mrb[6].mxu1  ;;  %v4839_v42 = vpop.f32.mrb[7].mxu0  ;;  %5160 = vmatpush3.bf16.msra.mxu1 %v5622_v48  ;;  %5139 = vmatprep.subr.bf16.mxu0 %v5623_v49  ;;  %v5652_v34 = vld [vmem:[%s7130_s1 + $0x9e8] sm:$0xff]   ;;  %v5655_v37 = vld [vmem:[%s7130_s1 + $0x970] sm:$0xff]   ;;  %v257_v48 = vpack.c.bf16 %v209_v46, %v209_v46  ;;  %v206_v49 = vld [vmem:[%s5955_s7 + $0x120] sm:$0xff] }
 0x126   : > { %v3460_v39 = vadd.f32 %v4837_v33, %v6636_v58  ;;  %v4861_v45 = vpop.f32.mrb[7].mxu1  ;;  %5161 = vmatprep.subr.bf16.mxu1 %v5624_v50  ;;  %v205_v58 = vld [vmem:[%s5955_s7 + $0x118] sm:$0xff]  ;;  %v5651_v33 = vld [vmem:[%s7130_s1 + $0x968] sm:$0xff]   ;;  %v5658_v40 = vld [vmem:[%s7130_s1 + $0x9b0] sm:$0xff]  }
 0x127   : > { %v253_v61 = vpack.c.bf16 %v205_v58, %v205_v58  ;;  %v5660_v42 = vld [vmem:[%s7130_s1 + $0x9f8] sm:$0xff]   ;;  %v207_v45 = vld [vmem:[%s5955_s7 + $0x128] sm:$0xff]  ;;  %v208_v50 = vld [vmem:[%s5955_s7 + $0x130] sm:$0xff] }
 0x128   : > { %v6733_v43 = vadd.f32 %v4859_v36, %v3460_v39  ;;  %5140 = vmatpush3.bf16.msra.mxu0 %v5625_v51  ;;  %v5654_v36 = vld [vmem:[%s7130_s1 + $0x9a8] sm:$0xff]   ;;  %v5657_v39 = vld [vmem:[%s7130_s1 + $0x930] sm:$0xff]   ;;  %v255_v47 = vpack.c.bf16 %v207_v45, %v207_v45  ;;  %v254_v51 = vpack.c.bf16 %v206_v49, %v206_v49 }
 0x129   : > { %5162 = vmatpush3.bf16.msra.mxu1 %v5626_v52  ;;  %5141 = vmatprep.subr.bf16.mxu0 %v5627_v53  ;;  %v256_v52 = vpack.c.bf16 %v208_v50, %v208_v50  ;;  %v5663_v53 = vld [vmem:[%s7130_s1 + $0xa40] sm:$0xff]   ;;  %v5668_v58 = vld [vmem:[%s7130_s1 + $0xac8] sm:$0xff]   ;;  %v5703_v49 = vld [vmem:[%s7130_s1 + $0xb50] sm:$0xff]  }
 0x12a   : > { %5163 = vmatprep.subr.bf16.mxu1 %v5628_v54  ;;  %4057 = vmatprep.mubr.bf16.mxu1 %v253_v61  ;;  %v5664_v54 = vld [vmem:[%s7130_s1 + $0xac0] sm:$0xff]   ;;  %v5671_v61 = vld [vmem:[%s7130_s1 + $0xa50] sm:$0xff]   ;;  %v5699_v45 = vld [vmem:[%s7130_s1 + $0xb48] sm:$0xff]  }
 0x12b   : > { %v5700_v46 = vld [vmem:[%s7130_s1 + $0xbc8] sm:$0xff]   ;;  %v5704_v50 = vld [vmem:[%s7130_s1 + $0xbd0] sm:$0xff]  }
 0x12c   : > { %5142 = vmatpush3.bf16.msra.mxu0 %v5629_v55  ;;  %v5665_v55 = vld [vmem:[%s7130_s1 + $0xa00] sm:$0xff]  }
 0x12d   : > { %5164 = vmatpush3.bf16.msra.mxu1 %v5630_v56  ;;  %5171 = vmatprep.subr.bf16.mxu0 %v5631_v1  ;;  %v5666_v56 = vld [vmem:[%s7130_s1 + $0xa80] sm:$0xff]   ;;  %v5675_v1 = vld [vmem:[%s7130_s1 + $0xa58] sm:$0xff]  }
 0x12e   : > { %5193 = vmatprep.subr.bf16.mxu1 %v5632_v2  ;;  %v5676_v2 = vld [vmem:[%s7130_s1 + $0xad8] sm:$0xff]  }
 0x12f   : > { %4018 = vmatmul.mubr.bf16.vlgmr.msra.gmra.mrb[32].mxu0 %v250_v62  ;;  %v5672_v62 = vld [vmem:[%s7130_s1 + $0xad0] sm:$0xff]  }
 0x130   : > { %4058 = vmatmul.mubr.bf16.vlgmr.msra.gmra.mrb[32].mxu1 %v252_v0  ;;  %5172 = vmatpush3.bf16.msra.mxu0 %v5633_v3  ;;  %v5674_v0 = vld [vmem:[%s7130_s1 + $0xa90] sm:$0xff]  }
 0x131   : > { %5194 = vmatpush3.bf16.msra.mxu1 %v5634_v4  ;;  %5173 = vmatprep.subr.bf16.mxu0 %v5635_v5  ;;  %v5677_v4 = vld [vmem:[%s7130_s1 + $0xa18] sm:$0xff]  }
 0x132   : > { %5195 = vmatprep.subr.bf16.mxu1 %v5636_v6  ;;  %4097 = vmatprep.mubr.bf16.mxu0 %v255_v47  ;;  %v5678_v6 = vld [vmem:[%s7130_s1 + $0xa98] sm:$0xff]   ;;  %v5701_v47 = vld [vmem:[%s7130_s1 + $0xb08] sm:$0xff]  }
 0x133   : > { %4137 = vmatprep.mubr.bf16.mxu1 %v257_v48  ;;  %v5702_v48 = vld [vmem:[%s7130_s1 + $0xb88] sm:$0xff]  }
 0x134   : > { %5174 = vmatpush3.bf16.msra.mxu0 %v5637_v7 }
 0x135   : > { %5196 = vmatpush3.bf16.msra.mxu1 %v5638_v8  ;;  %5175 = vmatprep.subr.bf16.mxu0 %v5639_v9  ;;  %v5679_v8 = vld [vmem:[%s7130_s1 + $0xa60] sm:$0xff]  }
 0x136   : > { %5197 = vmatprep.subr.bf16.mxu1 %v5640_v10 }
 0x138   : > { %5176 = vmatpush3.bf16.msra.mxu0 %v5641_v11  ;;  %v5680_v11 = vld [vmem:[%s7130_s1 + $0xae0] sm:$0xff]  }
 0x139   : > { %5198 = vmatpush3.bf16.msra.mxu1 %v5642_v12  ;;  %5177 = vmatprep.subr.bf16.mxu0 %v5643_v13 }
 0x13a   : > { %5199 = vmatprep.subr.bf16.mxu1 %v5644_v15 }
 0x13c   : > { %5178 = vmatpush3.bf16.msra.mxu0 %v5645_v17  ;;  %v5682_v17 = vld [vmem:[%s7130_s1 + $0xaa0] sm:$0xff]  }
 0x13d   : > { %5200 = vmatpush3.bf16.msra.mxu1 %v5646_v19  ;;  %5179 = vmatprep.subr.bf16.mxu0 %v5647_v22  ;;  %v5684_v22 = vld [vmem:[%s7130_s1 + $0xae8] sm:$0xff]  }
 0x13e   : > { %5201 = vmatprep.subr.bf16.mxu1 %v5648_v25  ;;  %v5687_v25 = vld [vmem:[%s7130_s1 + $0xa70] sm:$0xff]  }
 0x140   : > { %5180 = vmatpush3.bf16.msra.mxu0 %v5649_v28  ;;  %v5690_v28 = vld [vmem:[%s7130_s1 + $0xab0] sm:$0xff]  }
 0x141   : > { %5202 = vmatpush3.bf16.msra.mxu1 %v5650_v30  ;;  %5181 = vmatprep.subr.bf16.mxu0 %v5651_v33  ;;  %v5692_v30 = vld [vmem:[%s7130_s1 + $0xaf8] sm:$0xff]   ;;  %v211_v33 = vld [vmem:[%s5955_s7 + $0x148] sm:$0xff] }
 0x142   : > { %v4879_v14 = vpop.f32.mrb[8].mxu0  ;;  %5203 = vmatprep.subr.bf16.mxu1 %v5652_v34  ;;  %v259_v34 = vpack.c.bf16 %v211_v33, %v211_v33 }
 0x143   : > { %v4901_v16 = vpop.f32.mrb[8].mxu1  ;;  %v4880_v18 = vpop.f32.mrb[9].mxu0 }
 0x144   : > { %v4881_v20 = vadd.f32 %v4880_v18, %v4879_v14  ;;  %v4902_v21 = vpop.f32.mrb[9].mxu1  ;;  %v4882_v24 = vpop.f32.mrb[10].mxu0  ;;  %5182 = vmatpush3.bf16.msra.mxu0 %v5653_v35  ;;  %v5681_v14 = vld [vmem:[%s7130_s1 + $0xa20] sm:$0xff]   ;;  %v213_v35 = vld [vmem:[%s5955_s7 + $0x158] sm:$0xff] }
 0x145   : > { %v4903_v23 = vadd.f32 %v4902_v21, %v4901_v16  ;;  %v4904_v27 = vpop.f32.mrb[10].mxu1  ;;  %v4883_v29 = vpop.f32.mrb[11].mxu0  ;;  %5204 = vmatpush3.bf16.msra.mxu1 %v5654_v36  ;;  %5183 = vmatprep.subr.bf16.mxu0 %v5655_v37  ;;  %v5686_v24 = vld [vmem:[%s7130_s1 + $0xaa8] sm:$0xff]   ;;  %v210_v36 = vld [vmem:[%s5955_s7 + $0x140] sm:$0xff]  ;;  %v212_v37 = vld [vmem:[%s5955_s7 + $0x150] sm:$0xff] }
 0x146   : > { %v3540_v26 = vadd.f32 %v4881_v20, %v6733_v43  ;;  %v4905_v32 = vpop.f32.mrb[11].mxu1  ;;  %5205 = vmatprep.subr.bf16.mxu1 %v5656_v38  ;;  %v5661_v43 = vld [vmem:[%s7130_s1 + $0x938] sm:$0xff]   ;;  %v5683_v20 = vld [vmem:[%s7130_s1 + $0xa68] sm:$0xff]   ;;  %v5689_v27 = vld [vmem:[%s7130_s1 + $0xa30] sm:$0xff]   ;;  %v261_v38 = vpack.c.bf16 %v213_v35, %v213_v35 }
 0x147   : > { %v5691_v29 = vld [vmem:[%s7130_s1 + $0xa78] sm:$0xff]  }
 0x148   : > { %v6836_v31 = vadd.f32 %v4903_v23, %v3540_v26  ;;  %5184 = vmatpush3.bf16.msra.mxu0 %v5657_v39  ;;  %v5685_v23 = vld [vmem:[%s7130_s1 + $0xa28] sm:$0xff]   ;;  %v5688_v26 = vld [vmem:[%s7130_s1 + $0xaf0] sm:$0xff]   ;;  %v5694_v32 = vld [vmem:[%s7130_s1 + $0xab8] sm:$0xff]   ;;  %v258_v39 = vpack.c.bf16 %v210_v36, %v210_v36 }
 0x149   : > { %5206 = vmatpush3.bf16.msra.mxu1 %v5658_v40  ;;  %5185 = vmatprep.subr.bf16.mxu0 %v5659_v41  ;;  %v260_v40 = vpack.c.bf16 %v212_v37, %v212_v37  ;;  %v5695_v41 = vld [vmem:[%s7130_s1 + $0xb40] sm:$0xff]  }
 0x14a   : > { %5207 = vmatprep.subr.bf16.mxu1 %v5660_v42  ;;  %v5696_v42 = vld [vmem:[%s7130_s1 + $0xbc0] sm:$0xff]  }
 0x14c   : > { %5186 = vmatpush3.bf16.msra.mxu0 %v5661_v43  ;;  %v5697_v43 = vld [vmem:[%s7130_s1 + $0xb00] sm:$0xff]  }
 0x14d   : > { %5208 = vmatpush3.bf16.msra.mxu1 %v5662_v44  ;;  %5215 = vmatprep.subr.bf16.mxu0 %v5663_v53  ;;  %v5698_v44 = vld [vmem:[%s7130_s1 + $0xb80] sm:$0xff]   ;;  %v5707_v53 = vld [vmem:[%s7130_s1 + $0xb58] sm:$0xff]  }
 0x14e   : > { %5237 = vmatprep.subr.bf16.mxu1 %v5664_v54  ;;  %v5708_v54 = vld [vmem:[%s7130_s1 + $0xbd8] sm:$0xff]  }
 0x14f   : > { %4098 = vmatmul.mubr.bf16.vlgmr.msra.gmra.mrb[36].mxu0 %v254_v51  ;;  %v5705_v51 = vld [vmem:[%s7130_s1 + $0xb10] sm:$0xff]  }
 0x150   : > { %4138 = vmatmul.mubr.bf16.vlgmr.msra.gmra.mrb[36].mxu1 %v256_v52  ;;  %5216 = vmatpush3.bf16.msra.mxu0 %v5665_v55  ;;  %v5706_v52 = vld [vmem:[%s7130_s1 + $0xb90] sm:$0xff]  }
 0x151   : > { %5238 = vmatpush3.bf16.msra.mxu1 %v5666_v56  ;;  %5217 = vmatprep.subr.bf16.mxu0 %v5667_v57  ;;  %v5709_v56 = vld [vmem:[%s7130_s1 + $0xb18] sm:$0xff]  }
 0x152   : > { %5239 = vmatprep.subr.bf16.mxu1 %v5668_v58  ;;  %4177 = vmatprep.mubr.bf16.mxu0 %v259_v34  ;;  %v5710_v58 = vld [vmem:[%s7130_s1 + $0xb98] sm:$0xff]  }
 0x153   : > { %4217 = vmatprep.mubr.bf16.mxu1 %v261_v38 }
 0x154   : > { %5218 = vmatpush3.bf16.msra.mxu0 %v5669_v59 }
 0x155   : > { %5240 = vmatpush3.bf16.msra.mxu1 %v5670_v60  ;;  %5219 = vmatprep.subr.bf16.mxu0 %v5671_v61  ;;  %v5711_v60 = vld [vmem:[%s7130_s1 + $0xb60] sm:$0xff]  }
 0x156   : > { %5241 = vmatprep.subr.bf16.mxu1 %v5672_v62 }
 0x158   : > { %5220 = vmatpush3.bf16.msra.mxu0 %v5673_v63  ;;  %v5712_v63 = vld [vmem:[%s7130_s1 + $0xbe0] sm:$0xff]  }
 0x159   : > { %5242 = vmatpush3.bf16.msra.mxu1 %v5674_v0  ;;  %5221 = vmatprep.subr.bf16.mxu0 %v5675_v1 }
 0x15a   : > { %5243 = vmatprep.subr.bf16.mxu1 %v5676_v2  ;;  %v5713_v2 = vld [vmem:[%s7130_s1 + $0xb20] sm:$0xff]  }
 0x15c   : > { %5222 = vmatpush3.bf16.msra.mxu0 %v5677_v4 }
 0x15d   : > { %5244 = vmatpush3.bf16.msra.mxu1 %v5678_v6  ;;  %5223 = vmatprep.subr.bf16.mxu0 %v5679_v8  ;;  %v5715_v8 = vld [vmem:[%s7130_s1 + $0xb68] sm:$0xff]  }
 0x15e   : > { %5245 = vmatprep.subr.bf16.mxu1 %v5680_v11  ;;  %v5717_v11 = vld [vmem:[%s7130_s1 + $0xb28] sm:$0xff]  }
 0x160   : > { %5224 = vmatpush3.bf16.msra.mxu0 %v5681_v14  ;;  %v5720_v14 = vld [vmem:[%s7130_s1 + $0xbf0] sm:$0xff]  }
 0x161   : > { %5246 = vmatpush3.bf16.msra.mxu1 %v5682_v17  ;;  %5225 = vmatprep.subr.bf16.mxu0 %v5683_v20  ;;  %v5723_v17 = vld [vmem:[%s7130_s1 + $0xb78] sm:$0xff]  }
 0x162   : > { %v4923_v3 = vpop.f32.mrb[12].mxu0  ;;  %5247 = vmatprep.subr.bf16.mxu1 %v5684_v22  ;;  %v5726_v20 = vld [vmem:[%s7130_s1 + $0xbb8] sm:$0xff]  }
 0x163   : > { %v4945_v5 = vpop.f32.mrb[12].mxu1  ;;  %v4924_v7 = vpop.f32.mrb[13].mxu0  ;;  %v217_v22 = vld [vmem:[%s5955_s7 + $0x178] sm:$0xff] }
 0x164   : > { %v4925_v9 = vadd.f32 %v4924_v7, %v4923_v3  ;;  %v4946_v10 = vpop.f32.mrb[13].mxu1  ;;  %v4926_v13 = vpop.f32.mrb[14].mxu0  ;;  %5226 = vmatpush3.bf16.msra.mxu0 %v5685_v23  ;;  %v214_v23 = vld [vmem:[%s5955_s7 + $0x160] sm:$0xff] }
 0x165   : > { %v4947_v12 = vadd.f32 %v4946_v10, %v4945_v5  ;;  %v4948_v16 = vpop.f32.mrb[14].mxu1  ;;  %v4927_v18 = vpop.f32.mrb[15].mxu0  ;;  %5248 = vmatpush3.bf16.msra.mxu1 %v5686_v24  ;;  %5227 = vmatprep.subr.bf16.mxu0 %v5687_v25  ;;  %v5714_v5 = vld [vmem:[%s7130_s1 + $0xba0] sm:$0xff]   ;;  %v5716_v10 = vld [vmem:[%s7130_s1 + $0xbe8] sm:$0xff]   ;;  %v5719_v13 = vld [vmem:[%s7130_s1 + $0xb70] sm:$0xff]   ;;  %v265_v25 = vpack.c.bf16 %v217_v22, %v217_v22 }
 0x166   : > { %v3620_v15 = vadd.f32 %v4925_v9, %v6836_v31  ;;  %v4949_v21 = vpop.f32.mrb[15].mxu1  ;;  %5249 = vmatprep.subr.bf16.mxu1 %v5688_v26  ;;  %v5693_v31 = vld [vmem:[%s7130_s1 + $0xa38] sm:$0xff]   ;;  %v5722_v16 = vld [vmem:[%s7130_s1 + $0xbb0] sm:$0xff]   ;;  %v262_v26 = vpack.c.bf16 %v214_v23, %v214_v23 }
 0x167   : > { %v5724_v18 = vld [vmem:[%s7130_s1 + $0xbf8] sm:$0xff]   ;;  %v215_v21 = vld [vmem:[%s5955_s7 + $0x168] sm:$0xff] }
 0x168   : > { %v6939_v19 = vadd.f32 %v4947_v12, %v3620_v15  ;;  %5228 = vmatpush3.bf16.msra.mxu0 %v5689_v27  ;;  %v5718_v12 = vld [vmem:[%s7130_s1 + $0xba8] sm:$0xff]   ;;  %v5721_v15 = vld [vmem:[%s7130_s1 + $0xb30] sm:$0xff]   ;;  %v263_v24 = vpack.c.bf16 %v215_v21, %v215_v21 }
 0x169   : > { %5250 = vmatpush3.bf16.msra.mxu1 %v5690_v28  ;;  %5229 = vmatprep.subr.bf16.mxu0 %v5691_v29  ;;  %v216_v27 = vld [vmem:[%s5955_s7 + $0x170] sm:$0xff]  ;;  %s161_s7 = sand.u32 1, %s5781_s13  }
 0x16a   : > { %5251 = vmatprep.subr.bf16.mxu1 %v5692_v30  ;;  %v264_v28 = vpack.c.bf16 %v216_v27, %v216_v27  ;;  %s4384_s30 = sshll.u32 %s161_s7, 3  ;;  %s4308_s11 = scalar_lea.sflag [#allocation3], %s161_s7 }
 0x16b   : > { %s163_s5 = scalar_lea.vmem [#allocation2], %s4384_s30 }
 0x16c   : > { %5230 = vmatpush3.bf16.msra.mxu0 %v5693_v31  ;;  %s4321_s6 = sshll.u32 %s163_s5, 4  ;;  %s7089_s6 = int_to_ptr.vmem [resolvable:$true] %s4321_s6 }
 0x16d   : > { %5252 = vmatpush3.bf16.msra.mxu1 %v5694_v32  ;;  %5259 = vmatprep.subr.bf16.mxu0 %v5695_v41  ;;  %s5727_s17 = scalar_lea.vmem %s7089_s6, 128  ;;  %p5734_p0 = scmp.lt.s32.totalorder %s7089_s6, %s5732_s19 }
 0x16e   : > { %5281 = vmatprep.subr.bf16.mxu1 %v5696_v42  ;;  %p5728_p11 = scmp.ne.s32.totalorder %s7089_s6, %s5727_s17  ;;  %p5735_p1 = scmp.lt.s32.totalorder %s5733_s20, %s5727_s17 }
 0x16f   : > { %4178 = vmatmul.mubr.bf16.vlgmr.msra.gmra.mrb[40].mxu0 %v258_v39 }
 0x170   : > { %4218 = vmatmul.mubr.bf16.vlgmr.msra.gmra.mrb[40].mxu1 %v260_v40  ;;  %5260 = vmatpush3.bf16.msra.mxu0 %v5697_v43  ;;  %p5729_p12 = pnand %p5728_p11, %p5850_p5  ;;  %p5736_p2 = por %p5735_p1, %p5734_p0 }
 0x171   : > { %5282 = vmatpush3.bf16.msra.mxu1 %v5698_v44  ;;  %5261 = vmatprep.subr.bf16.mxu0 %v5699_v45 }
 0x172   : > { %5283 = vmatprep.subr.bf16.mxu1 %v5700_v46  ;;  %4257 = vmatprep.mubr.bf16.mxu0 %v263_v24  ;;  %p5730_p13 = pneg %p5729_p12 }
 0x173   : > { %4297 = vmatprep.mubr.bf16.mxu1 %v265_v25 }
 0x174   : > { %5262 = vmatpush3.bf16.msra.mxu0 %v5701_v47  ;;  %p5737_p3 = pnand %p5736_p2, %p5730_p13 }
 0x175   : > { %5284 = vmatpush3.bf16.msra.mxu1 %v5702_v48  ;;  %5263 = vmatprep.subr.bf16.mxu0 %v5703_v49 }
 0x176   : > { %5285 = vmatprep.subr.bf16.mxu1 %v5704_v50 }
 0x178   : > { %5264 = vmatpush3.bf16.msra.mxu0 %v5705_v51 }
 0x179   : > { %5286 = vmatpush3.bf16.msra.mxu1 %v5706_v52  ;;  %5265 = vmatprep.subr.bf16.mxu0 %v5707_v53 }
 0x17a   : > { %5287 = vmatprep.subr.bf16.mxu1 %v5708_v54 }
 0x17c   : > { %5266 = vmatpush3.bf16.msra.mxu0 %v5709_v56 }
 0x17d   : > { %5288 = vmatpush3.bf16.msra.mxu1 %v5710_v58  ;;  %5267 = vmatprep.subr.bf16.mxu0 %v5711_v60 }
 0x17e   : > { %5289 = vmatprep.subr.bf16.mxu1 %v5712_v63 }
 0x180   : > { %5268 = vmatpush3.bf16.msra.mxu0 %v5713_v2 }
 0x181   : > { %5290 = vmatpush3.bf16.msra.mxu1 %v5714_v5  ;;  %5269 = vmatprep.subr.bf16.mxu0 %v5715_v8 }
 0x182   : > { %v4967_v55 = vpop.f32.mrb[16].mxu0  ;;  %5291 = vmatprep.subr.bf16.mxu1 %v5716_v10 }
 0x183   : > { %v4989_v57 = vpop.f32.mrb[16].mxu1  ;;  %v4968_v59 = vpop.f32.mrb[17].mxu0 }
 0x184   : > { %v4969_v61 = vadd.f32 %v4968_v59, %v4967_v55  ;;  %v4990_v62 = vpop.f32.mrb[17].mxu1  ;;  %v4970_v1 = vpop.f32.mrb[18].mxu0  ;;  %5270 = vmatpush3.bf16.msra.mxu0 %v5717_v11 }
 0x185   : > { %v4991_v0 = vadd.f32 %v4990_v62, %v4989_v57  ;;  %v4992_v4 = vpop.f32.mrb[18].mxu1  ;;  %v4971_v6 = vpop.f32.mrb[19].mxu0  ;;  %5292 = vmatpush3.bf16.msra.mxu1 %v5718_v12  ;;  %5271 = vmatprep.subr.bf16.mxu0 %v5719_v13 }
 0x186   : > { %v3700_v3 = vadd.f32 %v4969_v61, %v6939_v19  ;;  %v4993_v9 = vpop.f32.mrb[19].mxu1  ;;  %5293 = vmatprep.subr.bf16.mxu1 %v5720_v14  ;;  %v5725_v19 = vld [vmem:[%s7130_s1 + $0xb38] sm:$0xff]  }
 0x188   : > { %v3740_v7 = vadd.f32 %v4991_v0, %v3700_v3  ;;  %5272 = vmatpush3.bf16.msra.mxu0 %v5721_v15 }
 0x189   : > { %5294 = vmatpush3.bf16.msra.mxu1 %v5722_v16  ;;  %5273 = vmatprep.subr.bf16.mxu0 %v5723_v17 }
 0x18a   : > { %5295 = vmatprep.subr.bf16.mxu1 %v5724_v18 }
 0x18c   : > { %5274 = vmatpush3.bf16.msra.mxu0 %v5725_v19 }
 0x18d   : > { %5296 = vmatpush3.bf16.msra.mxu1 %v5726_v20 }
 0x18f   : > { %4258 = vmatmul.mubr.bf16.vlgmr.msra.gmra.mrb[44].mxu0 %v262_v26 }
 0x190   : > { %4298 = vmatmul.mubr.bf16.vlgmr.msra.gmra.mrb[44].mxu1 %v264_v28 }
 0x1a2   : > { %v5011_v29 = vpop.f32.mrb[20].mxu0 }
 0x1a3   : > { %v5033_v30 = vpop.f32.mrb[20].mxu1  ;;  %v5012_v31 = vpop.f32.mrb[21].mxu0 }
 0x1a4   : > { %v5013_v32 = vadd.f32 %v5012_v31, %v5011_v29  ;;  %v5034_v33 = vpop.f32.mrb[21].mxu1  ;;  %v5014_v34 = vpop.f32.mrb[22].mxu0 }
 0x1a5   : > { %v5035_v35 = vadd.f32 %v5034_v33, %v5033_v30  ;;  %v5036_v36 = vpop.f32.mrb[22].mxu1  ;;  %v5015_v37 = vpop.f32.mrb[23].mxu0 }
 0x1a6   : > { %v3780_v38 = vadd.f32 %v5013_v32, %v3740_v7  ;;  %v5037_v39 = vpop.f32.mrb[23].mxu1 }
 0x1a8   : > { %v3820_v40 = vadd.f32 %v5035_v35, %v3780_v38 }
 0x1c2   : > { %v5055_v41 = vpop.f32.mrb[24].mxu0 }
 0x1c3   : > { %v5077_v42 = vpop.f32.mrb[24].mxu1  ;;  %v5056_v43 = vpop.f32.mrb[25].mxu0 }
 0x1c4   : > { %v5078_v44 = vpop.f32.mrb[25].mxu1  ;;  %v5057_v45 = vadd.f32 %v5056_v43, %v5055_v41  ;;  %v5058_v47 = vpop.f32.mrb[26].mxu0 }
 0x1c5   : > { %v5079_v46 = vadd.f32 %v5078_v44, %v5077_v42  ;;  %v5080_v48 = vpop.f32.mrb[26].mxu1  ;;  %v5059_v49 = vpop.f32.mrb[27].mxu0 }
 0x1c6   : > { %v5081_v50 = vpop.f32.mrb[27].mxu1  ;;  %v3860_v51 = vadd.f32 %v5057_v45, %v3820_v40 }
 0x1c8   : > { %v3900_v52 = vadd.f32 %v5079_v46, %v3860_v51 }
 0x1e2   : > { %v5099_v53 = vpop.f32.mrb[28].mxu0 }
 0x1e3   : > { %v5121_v54 = vpop.f32.mrb[28].mxu1  ;;  %v5100_v55 = vpop.f32.mrb[29].mxu0 }
 0x1e4   : > { %v5101_v56 = vadd.f32 %v5100_v55, %v5099_v53  ;;  %v5122_v57 = vpop.f32.mrb[29].mxu1  ;;  %v5102_v58 = vpop.f32.mrb[30].mxu0 }
 0x1e5   : > { %v5123_v59 = vadd.f32 %v5122_v57, %v5121_v54  ;;  %v5124_v60 = vpop.f32.mrb[30].mxu1  ;;  %v5103_v61 = vpop.f32.mrb[31].mxu0 }
 0x1e6   : > { %v3940_v62 = vadd.f32 %v5101_v56, %v3900_v52  ;;  %v5125_v63 = vpop.f32.mrb[31].mxu1 }
 0x1e8   : > { %v3980_v0 = vadd.f32 %v5123_v59, %v3940_v62 }
 0x202   : > { %v5143_v1 = vpop.f32.mrb[32].mxu0 }
 0x203   : > { %v5165_v2 = vpop.f32.mrb[32].mxu1  ;;  %v5144_v3 = vpop.f32.mrb[33].mxu0 }
 0x204   : > { %v5166_v4 = vpop.f32.mrb[33].mxu1  ;;  %v5145_v5 = vadd.f32 %v5144_v3, %v5143_v1  ;;  %v5146_v7 = vpop.f32.mrb[34].mxu0 }
 0x205   : > { %v5167_v6 = vadd.f32 %v5166_v4, %v5165_v2  ;;  %v5168_v8 = vpop.f32.mrb[34].mxu1  ;;  %v5147_v9 = vpop.f32.mrb[35].mxu0 }
 0x206   : > { %v5169_v10 = vpop.f32.mrb[35].mxu1  ;;  %v4020_v11 = vadd.f32 %v5145_v5, %v3980_v0 }
 0x208   : > { %v4060_v12 = vadd.f32 %v5167_v6, %v4020_v11 }
 0x222   : > { %v5187_v13 = vpop.f32.mrb[36].mxu0 }
 0x223   : > { %v5209_v14 = vpop.f32.mrb[36].mxu1  ;;  %v5188_v15 = vpop.f32.mrb[37].mxu0 }
 0x224   : > { %v5189_v16 = vadd.f32 %v5188_v15, %v5187_v13  ;;  %v5210_v17 = vpop.f32.mrb[37].mxu1  ;;  %v5190_v18 = vpop.f32.mrb[38].mxu0 }
 0x225   : > { %v5211_v19 = vadd.f32 %v5210_v17, %v5209_v14  ;;  %v5212_v20 = vpop.f32.mrb[38].mxu1  ;;  %v5191_v21 = vpop.f32.mrb[39].mxu0 }
 0x226   : > { %v4100_v22 = vadd.f32 %v5189_v16, %v4060_v12  ;;  %v5213_v23 = vpop.f32.mrb[39].mxu1 }
 0x228   : > { %v4140_v24 = vadd.f32 %v5211_v19, %v4100_v22 }
 0x242   : > { %v5231_v25 = vpop.f32.mrb[40].mxu0 }
 0x243   : > { %v5253_v26 = vpop.f32.mrb[40].mxu1  ;;  %v5232_v27 = vpop.f32.mrb[41].mxu0 }
 0x244   : > { %v5233_v28 = vadd.f32 %v5232_v27, %v5231_v25  ;;  %v5254_v29 = vpop.f32.mrb[41].mxu1  ;;  %v5234_v30 = vpop.f32.mrb[42].mxu0 }
 0x245   : > { %v5255_v31 = vadd.f32 %v5254_v29, %v5253_v26  ;;  %v5256_v32 = vpop.f32.mrb[42].mxu1  ;;  %v5235_v33 = vpop.f32.mrb[43].mxu0 }
 0x246   : > { %v4180_v34 = vadd.f32 %v5233_v28, %v4140_v24  ;;  %v5257_v35 = vpop.f32.mrb[43].mxu1 }
 0x248   : > { %v4220_v36 = vadd.f32 %v5255_v31, %v4180_v34 }
 0x262   : > { %v5275_v37 = vpop.f32.mrb[44].mxu0 }
 0x263   : > { %v5297_v38 = vpop.f32.mrb[44].mxu1  ;;  %v5276_v39 = vpop.f32.mrb[45].mxu0 }
 0x264   : > { %v5298_v40 = vpop.f32.mrb[45].mxu1  ;;  %v5277_v41 = vadd.f32 %v5276_v39, %v5275_v37  ;;  %v5278_v43 = vpop.f32.mrb[46].mxu0 }
 0x265   : > { %v5299_v42 = vadd.f32 %v5298_v40, %v5297_v38  ;;  %v5300_v44 = vpop.f32.mrb[46].mxu1  ;;  %v5279_v45 = vpop.f32.mrb[47].mxu0 }
 0x266   : > { %v5301_v46 = vpop.f32.mrb[47].mxu1  ;;  %v4260_v47 = vadd.f32 %v5277_v41, %v4220_v36 }
 0x268   : > { %v4300_v48 = vadd.f32 %v5299_v42, %v4260_v47 }
 0x26a   : > { %4306 = vst.msk [vmem:[%s163_s5] sm:$0xff] %vm4305_vm0, %v4300_v48 }
 0x26b   : > { %5740 = shalt.err (!%p5737_p3)
}
 0x26c   : > { %s5741_s24 = scalar_lea.hbm %s7087_s10, 128  ;;  %s5745_s27 = scalar_lea.hbm %s7132_s3, 256 }
 0x26d   : > { %p5742_p4 = scmp.ne.s32.totalorder %s7087_s10, %s5741_s24  ;;  %p5746_p9 = scmp.lt.u32.totalorder %s7087_s10, %s7132_s3 }
 0x26e   : > { %p5747_p10 = scmp.lt.u32.totalorder %s5745_s27, %s5741_s24  ;;  %p5749_p12 = scmp.lt.u32.totalorder %s5741_s24, %s7087_s10 }
 0x26f   : > { %p5743_p7 = pnand %p5742_p4, %p5850_p5 }
 0x270   : > { %p5748_p11 = por %p5747_p10, %p5746_p9 }
 0x271   : > { %p5744_p8 = pneg %p5743_p7 }
 0x272   : > { %p5750_p13 = por %p5749_p12, %p5748_p11 }
 0x274   : > { %p5751_p0 = pnand %p5750_p13, %p5744_p8 }
 0x276   : > { %5754 = shalt.err (!%p5751_p0)
}
 0x277   : > { %5304 = dma.vmem_to_hbm [thread:$0]  (%p5850_p5), %s7089_s6, 128, %s7087_s10, %s4308_s11  }
 0x278 PF: > { %p5310_p1 = scmp.ge.s32.totalorder %s5789_s15, 2  ;;  %s4333_s7 = sand.u32 1, %s5777_s12  }
 0x279   : > { %s4334_s30 = scalar_lea.sflag [#allocation3], %s4333_s7 }
 0x27a   : > { %p5307_p2 = pnand %p5310_p1, %p5854_p6 }
 0x27c   : > { %5772 = dma.done.wait (!%p5307_p2), %s4334_s30, 128  }
 0x27d   : > { %5774 = vsyncadd (!%p5307_p2), %s4334_s30, 4294967168  ;;  %p13_p3 = scmp.ge.s32.totalorder %s5837_s18, 4   ;;  %s7135_s12 = smov %s5781_s13 }
 0x27e   : > { %s7136_s13 = smov %s5785_s14  ;;  %s7137_s14 = smov %s5848_s21 }
 0x27f   : > { %s7138_s15 = smov %s5837_s18  ;;  %15 = sbr.rel (!%p13_p3) target bundleno = 3 (0x3), region = 67 }
 0x286   :  { %4339 = vsyncpa [#allocation3], 1 }
 0x287   :  { %4341 = vsyncpa [#allocation3 + $0x1], 1 }

</bundles_post_ra>
